<compile_context>
chip_gen: v5e
topology: v5e:2x2
jax: 0.10.0
libtpu: 0.0.40
codegen_flags: <defaults>
</compile_context>

<pallas_src>
import functools

import jax
import jax.numpy as jnp
from jax.experimental import pallas as pl
from jax.experimental.pallas import tpu as pltpu

D_I3D = 2048       # i3d_r50 feature dim after blocks[6].proj = Identity
D_RESNET = 512     # resnet18 feature dim after fc = Identity
D_OUT = D_I3D + D_RESNET
HIDDEN = 32        # synthetic backbone stem width (per branch)

IMAGENET_MEAN = (0.485, 0.456, 0.406)
IMAGENET_STD = (0.229, 0.224, 0.225)


def _round_up(x, m):
    return ((x + m - 1) // m) * m


def _cdiv(a, b):
    return (a + b - 1) // b


# ----------------------------------------------------------------------------
# Kernel: fused stems + global mean-pool + fused heads + concat
# ----------------------------------------------------------------------------
def _fused_forward_kernel(x_ref, w1t_ref, b1_ref, wh_ref, bh_ref, o_ref,
                          acc_ref, *, n_pixels, tile_p, sub_p, tail_len):
    # x_ref:   (1, C, tile_p)     raw pixels, channel-major, pixels on lanes
    # w1t_ref: (2*HIDDEN, C)      fused stem weight (resnet norm folded in)
    # b1_ref:  (2*HIDDEN, 1)      fused stem bias
    # wh_ref:  (2*HIDDEN, D_OUT)  block-diagonal head weight (i3d | resnet)
    # bh_ref:  (1, D_OUT)         fused head bias
    # o_ref:   (1, 1, D_OUT)      per-batch output row (lane-dense, 20*128)
    # acc_ref: (2*HIDDEN, 128)    lane-wide pooled-sum accumulator (VMEM)
    k = pl.program_id(1)
    nk = pl.num_programs(1)

    @pl.when(k == 0)
    def _init():
        acc_ref[...] = jnp.zeros_like(acc_ref)

    if tail_len:
        # Only the LAST grid step has out-of-bounds tail columns (their DMA'd
        # contents are unspecified).  Zero them once in the local VMEM copy
        # instead of masking every step; their exact contribution relu(b1)
        # per column is removed once in the finalize epilogue.
        @pl.when(k == nk - 1)
        def _zero_tail():
            valid = tile_p - tail_len
            x_ref[0, :, pl.ds(valid, tail_len)] = jnp.zeros(
                (x_ref.shape[1], tail_len), x_ref.dtype)

    w1t = w1t_ref[...]                                   # (2H, C)
    b1 = b1_ref[...]                                     # (2H, 1)

    def accumulate(start):
        # Sub-chunk the big DMA block so the (2H, sub_p) f32 intermediate and
        # vreg pressure stay bounded regardless of tile_p.
        xs = x_ref[0, :, pl.ds(start, sub_p)].astype(jnp.float32)   # (C, sub_p)
        # Both stems at once on the MXU: (2H, C) @ (C, sub_p).
        h = jnp.dot(w1t, xs, preferred_element_type=jnp.float32)    # (2H, sub_p)
        h = jnp.maximum(h + b1, 0.0)
        # Lane-group partial reduce (2H, sub_p) -> (2H, 128): pure VALU adds
        # (tree), no per-step cross-lane XLU reduce, no 1-lane-wide stores.
        groups = [h[:, g * 128:(g + 1) * 128] for g in range(sub_p // 128)]
        while len(groups) > 1:
            nxt = [a + b for a, b in zip(groups[::2], groups[1::2])]
            if len(groups) % 2:
                nxt.append(groups[-1])
            groups = nxt
        acc_ref[...] += groups[0]

    num_sub = tile_p // sub_p
    if num_sub == 1:
        accumulate(0)
    else:
        @pl.loop(0, num_sub)
        def _inner(s):
            accumulate(pl.multiple_of(s * sub_p, sub_p))

    @pl.when(k == nk - 1)
    def _finalize():
        acc = acc_ref[...]                               # (2H, 128)
        if tail_len:
            # Each zeroed tail column contributed exactly relu(b1); remove the
            # total once, spread over the 128 lanes (no relayout needed).
            acc = acc - (tail_len / 128.0) * jnp.maximum(b1, 0.0)
        # Single cross-lane reduce + MXU matvec epilogue per batch element.
        pooled = (jnp.sum(acc, axis=1) * (1.0 / n_pixels)).reshape(1, 2 * HIDDEN)
        feats = (jnp.dot(pooled, wh_ref[...], preferred_element_type=jnp.float32)
                 + bh_ref[...])                          # (1, D_OUT)
        o_ref[0] = feats


# ----------------------------------------------------------------------------
# Host-side parameter folding
# ----------------------------------------------------------------------------
def _fold_params(params):
    mean = jnp.array(IMAGENET_MEAN, jnp.float32)               # (3,)
    std = jnp.array(IMAGENET_STD, jnp.float32)                 # (3,)

    # Fold (x/255 - mean)/std into the resnet stem: exact algebraic identity.
    rn_w1_f = params["rn_w1"] / (255.0 * std)[:, None]          # (3, 32)
    rn_b1_f = params["rn_b1"] - (mean / std)[None, :] @ params["rn_w1"]  # (1, 32)

    w1 = jnp.concatenate([params["i3d_w1"], rn_w1_f], axis=1)   # (3, 64)
    b1 = jnp.concatenate([params["i3d_b1"], rn_b1_f], axis=1)   # (1, 64)

    # Block-diagonal fused head: [i3d_w2 0; 0 rn_w2] -> the matvec output is
    # already torch.cat([i3d_feat, resnet_feat], dim=1).
    wh = jnp.zeros((2 * HIDDEN, D_OUT), jnp.float32)
    wh = wh.at[:HIDDEN, :D_I3D].set(params["i3d_w2"])
    wh = wh.at[HIDDEN:, D_I3D:].set(params["rn_w2"])
    bh = jnp.concatenate([params["i3d_b2"], params["rn_b2"]], axis=1)  # (1, D_OUT)

    return w1.T, b1.T, wh, bh          # (64,3), (64,1), (64,2560), (1,2560)


# ----------------------------------------------------------------------------
# Tiling selection (all multiples of 128; no host-side padding needed)
# ----------------------------------------------------------------------------
def _choose_tiles(P, max_tile, sub_tile):
    sub_p = _round_up(min(sub_tile, P), 128)            # inner compute chunk
    max_tile = max(max_tile, sub_p)
    max_tile_aligned = (max_tile // sub_p) * sub_p
    nk = _cdiv(P, max_tile_aligned)
    tile_p = _round_up(_cdiv(P, nk), sub_p)              # balanced DMA block
    nk = _cdiv(P, tile_p)
    tail_len = nk * tile_p - P                           # only in the last block
    return tile_p, sub_p, nk, tail_len


# ----------------------------------------------------------------------------
# Forward (mirrors I3DResNetCombined.forward)
# ----------------------------------------------------------------------------
def forward(x, params, max_tile=512 * 1024, sub_tile=2048):
    # x: (B, C, T, H, W) raw pixels (0..255); f32 (uint8 would also be cast
    # to f32 in-kernel).
    B, C, T, H, W = x.shape
    P = T * H * W

    # Channel-major, pixels on the lane axis.  Layout-identical to NCTHW, so
    # this reshape is free (no host transpose / extra HBM pass).
    x_cp = x.reshape(B, C, P)

    tile_p, sub_p, nk, tail_len = _choose_tiles(P, max_tile, sub_tile)
    w1t, b1c, wh, bh = _fold_params(params)

    kernel = functools.partial(
        _fused_forward_kernel, n_pixels=P, tile_p=tile_p, sub_p=sub_p,
        tail_len=tail_len)

    # VMEM budget: double-buffered x block + double-buffered weights + the
    # per-sub-chunk intermediate, plus margin.  Set explicitly so large tiles
    # work on v5e's 16 MiB default scoped limit and stay under v7x's 64 MiB.
    itemsize = jnp.dtype(x_cp.dtype).itemsize
    vmem_limit = int(min(
        2 * C * tile_p * itemsize
        + 2 * 4 * (2 * HIDDEN * (C + 1 + D_OUT) + D_OUT)
        + 4 * 4 * 2 * HIDDEN * sub_p
        + (16 << 20),
        64 << 20))

    out = pl.pallas_call(
        kernel,
        out_shape=jax.ShapeDtypeStruct((B, 1, D_OUT), jnp.float32),
        grid=(B, nk),
        in_specs=[
            pl.BlockSpec((1, C, tile_p), lambda b, k: (b, 0, k)),
            # TODO(synk): on v7x, pipeline_mode=pl.Buffered(1) on the four
            # grid-invariant weight specs would reclaim ~0.7 MB of VMEM.
            pl.BlockSpec((2 * HIDDEN, C), lambda b, k: (0, 0)),
            pl.BlockSpec((2 * HIDDEN, 1), lambda b, k: (0, 0)),
            pl.BlockSpec((2 * HIDDEN, D_OUT), lambda b, k: (0, 0)),
            pl.BlockSpec((1, D_OUT), lambda b, k: (0, 0)),
        ],
        out_specs=pl.BlockSpec((1, 1, D_OUT), lambda b, k: (b, 0, 0)),
        scratch_shapes=[pltpu.VMEM((2 * HIDDEN, 128), jnp.float32)],
        compiler_params=pltpu.CompilerParams(
            dimension_semantics=("parallel", "arbitrary"),
            vmem_limit_bytes=vmem_limit),
    )(x_cp, w1t, b1c, wh, bh)

    return out.reshape(B, D_OUT)


# ----------------------------------------------------------------------------
# Parameter init (deterministic, no checkpoint load)
# ----------------------------------------------------------------------------
def init_params(key, c=3):
    k = jax.random.split(key, 8)

    def dense(kw, kb, fan_in, fan_out):
        scale = 1.0 / jnp.sqrt(jnp.float32(fan_in))
        w = jax.random.normal(kw, (fan_in, fan_out), jnp.float32) * scale
        b = jax.random.normal(kb, (1, fan_out), jnp.float32) * 0.01
        return w, b

    i3d_w1, i3d_b1 = dense(k[0], k[1], c, HIDDEN)
    i3d_w2, i3d_b2 = dense(k[2], k[3], HIDDEN, D_I3D)
    rn_w1, rn_b1 = dense(k[4], k[5], c, HIDDEN)
    rn_w2, rn_b2 = dense(k[6], k[7], HIDDEN, D_RESNET)
    return dict(
        i3d_w1=i3d_w1, i3d_b1=i3d_b1, i3d_w2=i3d_w2, i3d_b2=i3d_b2,
        rn_w1=rn_w1, rn_b1=rn_b1, rn_w2=rn_w2, rn_b2=rn_b2,
    )


# ----------------------------------------------------------------------------
# Pure-JAX reference with the ORIGINAL (unfused, unfolded) pipeline
# ----------------------------------------------------------------------------
def reference_forward(x, params):
    B, C, T, H, W = x.shape
    hp = jax.lax.Precision.HIGHEST
    xr = jnp.transpose(x, (0, 2, 3, 4, 1)).reshape(B, T, H * W, C)

    # i3d branch: stem -> global pool over (T,H,W) -> head
    h = jax.nn.relu(
        jnp.einsum("bthc,cd->bthd", xr, params["i3d_w1"], precision=hp)
        + params["i3d_b1"])
    pooled = h.reshape(B, T * H * W, HIDDEN).mean(axis=1)
    i3d_feat = jnp.dot(pooled, params["i3d_w2"], precision=hp) + params["i3d_b2"]

    # resnet branch: normalize -> stem -> per-frame pool -> head -> mean over T
    mean = jnp.array(IMAGENET_MEAN, jnp.float32)
    std = jnp.array(IMAGENET_STD, jnp.float32)
    xn = (xr / 255.0 - mean) / std
    hr = jax.nn.relu(
        jnp.einsum("bthc,cd->bthd", xn, params["rn_w1"], precision=hp)
        + params["rn_b1"])
    frame = hr.mean(axis=2)                                     # (B, T, HIDDEN)
    frame_feat = (jnp.einsum("btd,de->bte", frame, params["rn_w2"], precision=hp)
                  + params["rn_b2"])                            # (B, T, 512)
    resnet_feat = frame_feat.mean(axis=1)                       # (B, 512)

    return jnp.concatenate([i3d_feat, resnet_feat], axis=1)


if __name__ == "__main__":
    B, C, T, H, W = 2, 3, 8, 14, 14      # P = 1568: exercises tail handling
    key = jax.random.PRNGKey(0)
    x = jax.random.uniform(key, (B, C, T, H, W), dtype=jnp.float32,
                           minval=0.0, maxval=255.0)
    params = init_params(jax.random.PRNGKey(42), c=C)

    ref = reference_forward(x, params)
    ref_scale = float(jnp.max(jnp.abs(ref)))

    configs = [
        ("default", {}),                                     # single big block
        ("small_tiles", dict(max_tile=512, sub_tile=256)),   # multi grid step,
                                                             # inner loop, tail
    ]
    for name, kwargs in configs:
        fwd = jax.jit(functools.partial(forward, **kwargs))
        out = jax.block_until_ready(fwd(x, params))
        assert out.shape == (B, D_OUT), (name, out.shape)
        assert out.dtype == jnp.float32, name
        assert bool(jnp.all(jnp.isfinite(out))), name
        max_err = float(jnp.max(jnp.abs(out - ref)))
        assert max_err <= 1e-2 * ref_scale + 1e-3, (name, max_err, ref_scale)

    print("KERNEL_OK")
</pallas_src>

<mosaic_0001>
module attributes {stable_mosaic.version = 11 : i64} {
  func.func @_fused_forward_kernel(%arg0: i32, %arg1: i32, %arg2: memref<1x3x1664xf32, #tpu.memory_space<vmem>>, %arg3: memref<64x3xf32, #tpu.memory_space<vmem>>, %arg4: memref<64x1xf32, #tpu.memory_space<vmem>>, %arg5: memref<64x2560xf32, #tpu.memory_space<vmem>>, %arg6: memref<1x2560xf32, #tpu.memory_space<vmem>>, %arg7: memref<1x1x2560xf32, #tpu.memory_space<vmem>>, %arg8: memref<64x128xf32, #tpu.memory_space<vmem>>) attributes {dimension_semantics = [#tpu.dimension_semantics<parallel>, #tpu.dimension_semantics<arbitrary>], iteration_bounds = array<i64: 2, 1>, scalar_prefetch = 0 : i64, scratch_operands = 1 : i64, tpu.core_type = #tpu.core_type<tc>, window_params = [{transform_indices = @transform_0, window_bounds = array<i64: 1, 3, 1664>}, {pipeline_mode = #tpu.pipeline_mode<synchronous>, transform_indices = @transform_1, window_bounds = array<i64: 64, 3>}, {pipeline_mode = #tpu.pipeline_mode<synchronous>, transform_indices = @transform_2, window_bounds = array<i64: 64, 1>}, {pipeline_mode = #tpu.pipeline_mode<synchronous>, transform_indices = @transform_3, window_bounds = array<i64: 64, 2560>}, {pipeline_mode = #tpu.pipeline_mode<synchronous>, transform_indices = @transform_4, window_bounds = array<i64: 1, 2560>}, {transform_indices = @transform_5, window_bounds = array<i64: 1, 1, 2560>}]} {
    %c0_i32 = arith.constant 0 : i32
    %0 = arith.cmpi eq, %arg1, %c0_i32 : i32
    %1 = arith.extui %0 : i1 to i32
    %c0_i32_0 = arith.constant 0 : i32
    %2 = arith.cmpi ne, %1, %c0_i32_0 : i32
    scf.if %2 {
      %cst_16 = arith.constant 0.000000e+00 : f32
      %46 = vector.broadcast %cst_16 : f32 to vector<64x128xf32>
      %c0_17 = arith.constant 0 : index
      %c0_18 = arith.constant 0 : index
      %47 = vector.load %arg8[%c0_17, %c0_18] : memref<64x128xf32, #tpu.memory_space<vmem>>, vector<64x128xf32>
      tpu.vector_store %arg8[%c0_17, %c0_18], %46 {strides = array<i32>} : memref<64x128xf32, #tpu.memory_space<vmem>>, vector<64x128xf32>,
    } else {
    }
    %c0_i32_1 = arith.constant 0 : i32
    %3 = arith.cmpi eq, %arg1, %c0_i32_1 : i32
    %4 = arith.extui %3 : i1 to i32
    %c0_i32_2 = arith.constant 0 : i32
    %5 = arith.cmpi ne, %4, %c0_i32_2 : i32
    scf.if %5 {
      %cst_16 = arith.constant 0.000000e+00 : f32
      %46 = vector.broadcast %cst_16 : f32 to vector<3x96xf32>
      %c0_17 = arith.constant 0 : index
      %c0_18 = arith.constant 0 : index
      %c1568 = arith.constant 1568 : index
      %47 = vector.load %arg2[%c0_17, %c0_18, %c1568] : memref<1x3x1664xf32, #tpu.memory_space<vmem>>, vector<1x3x96xf32>
      %48 = vector.shape_cast %47 : vector<1x3x96xf32> to vector<3x96xf32>
      %49 = vector.shape_cast %46 : vector<3x96xf32> to vector<1x3x96xf32>
      tpu.vector_store %arg2[%c0_17, %c0_18, %c1568], %49 {strides = array<i32>} : memref<1x3x1664xf32, #tpu.memory_space<vmem>>, vector<1x3x96xf32>,
    } else {
    }
    %c0 = arith.constant 0 : index
    %c0_3 = arith.constant 0 : index
    %6 = vector.load %arg3[%c0, %c0_3] : memref<64x3xf32, #tpu.memory_space<vmem>>, vector<64x3xf32>
    %c0_4 = arith.constant 0 : index
    %c0_5 = arith.constant 0 : index
    %7 = vector.load %arg4[%c0_4, %c0_5] : memref<64x1xf32, #tpu.memory_space<vmem>>, vector<64x1xf32>
    %c0_6 = arith.constant 0 : index
    %c0_7 = arith.constant 0 : index
    %c0_8 = arith.constant 0 : index
    %8 = vector.load %arg2[%c0_6, %c0_7, %c0_8] : memref<1x3x1664xf32, #tpu.memory_space<vmem>>, vector<1x3x1664xf32>
    %9 = vector.shape_cast %8 : vector<1x3x1664xf32> to vector<3x1664xf32>
    %cst = arith.constant dense<0.000000e+00> : vector<64x1664xf32>
    %10 = tpu.matmul %6, %9, %cst {dimension_numbers = #tpu.dot_dimension_numbers<[1], [0], [0], [1], [0, 0, 1, 1], [], []>} : vector<64x3xf32>, vector<3x1664xf32>, vector<64x1664xf32> -> vector<64x1664xf32>
    %11 = vector.broadcast %7 : vector<64x1xf32> to vector<64x1664xf32>
    %12 = arith.addf %10, %11 : vector<64x1664xf32>
    %cst_9 = arith.constant 0.000000e+00 : f32
    %13 = vector.broadcast %cst_9 : f32 to vector<64x1664xf32>
    %14 = arith.maximumf %12, %13 : vector<64x1664xf32>
    %15 = vector.extract_strided_slice %14 {offsets = [0, 0], sizes = [64, 128], strides = [1, 1]} : vector<64x1664xf32> to vector<64x128xf32>
    %16 = vector.extract_strided_slice %14 {offsets = [0, 128], sizes = [64, 128], strides = [1, 1]} : vector<64x1664xf32> to vector<64x128xf32>
    %17 = vector.extract_strided_slice %14 {offsets = [0, 256], sizes = [64, 128], strides = [1, 1]} : vector<64x1664xf32> to vector<64x128xf32>
    %18 = vector.extract_strided_slice %14 {offsets = [0, 384], sizes = [64, 128], strides = [1, 1]} : vector<64x1664xf32> to vector<64x128xf32>
    %19 = vector.extract_strided_slice %14 {offsets = [0, 512], sizes = [64, 128], strides = [1, 1]} : vector<64x1664xf32> to vector<64x128xf32>
    %20 = vector.extract_strided_slice %14 {offsets = [0, 640], sizes = [64, 128], strides = [1, 1]} : vector<64x1664xf32> to vector<64x128xf32>
    %21 = vector.extract_strided_slice %14 {offsets = [0, 768], sizes = [64, 128], strides = [1, 1]} : vector<64x1664xf32> to vector<64x128xf32>
    %22 = vector.extract_strided_slice %14 {offsets = [0, 896], sizes = [64, 128], strides = [1, 1]} : vector<64x1664xf32> to vector<64x128xf32>
    %23 = vector.extract_strided_slice %14 {offsets = [0, 1024], sizes = [64, 128], strides = [1, 1]} : vector<64x1664xf32> to vector<64x128xf32>
    %24 = vector.extract_strided_slice %14 {offsets = [0, 1152], sizes = [64, 128], strides = [1, 1]} : vector<64x1664xf32> to vector<64x128xf32>
    %25 = vector.extract_strided_slice %14 {offsets = [0, 1280], sizes = [64, 128], strides = [1, 1]} : vector<64x1664xf32> to vector<64x128xf32>
    %26 = vector.extract_strided_slice %14 {offsets = [0, 1408], sizes = [64, 128], strides = [1, 1]} : vector<64x1664xf32> to vector<64x128xf32>
    %27 = vector.extract_strided_slice %14 {offsets = [0, 1536], sizes = [64, 128], strides = [1, 1]} : vector<64x1664xf32> to vector<64x128xf32>
    %28 = arith.addf %15, %16 : vector<64x128xf32>
    %29 = arith.addf %17, %18 : vector<64x128xf32>
    %30 = arith.addf %19, %20 : vector<64x128xf32>
    %31 = arith.addf %21, %22 : vector<64x128xf32>
    %32 = arith.addf %23, %24 : vector<64x128xf32>
    %33 = arith.addf %25, %26 : vector<64x128xf32>
    %34 = arith.addf %28, %29 : vector<64x128xf32>
    %35 = arith.addf %30, %31 : vector<64x128xf32>
    %36 = arith.addf %32, %33 : vector<64x128xf32>
    %37 = arith.addf %34, %35 : vector<64x128xf32>
    %38 = arith.addf %36, %27 : vector<64x128xf32>
    %39 = arith.addf %37, %38 : vector<64x128xf32>
    %c0_10 = arith.constant 0 : index
    %c0_11 = arith.constant 0 : index
    %40 = vector.load %arg8[%c0_10, %c0_11] : memref<64x128xf32, #tpu.memory_space<vmem>>, vector<64x128xf32>
    %41 = arith.addf %40, %39 : vector<64x128xf32>
    %c0_12 = arith.constant 0 : index
    %c0_13 = arith.constant 0 : index
    %42 = vector.load %arg8[%c0_12, %c0_13] : memref<64x128xf32, #tpu.memory_space<vmem>>, vector<64x128xf32>
    tpu.vector_store %arg8[%c0_12, %c0_13], %41 {strides = array<i32>} : memref<64x128xf32, #tpu.memory_space<vmem>>, vector<64x128xf32>,
    %c0_i32_14 = arith.constant 0 : i32
    %43 = arith.cmpi eq, %arg1, %c0_i32_14 : i32
    %44 = arith.extui %43 : i1 to i32
    %c0_i32_15 = arith.constant 0 : i32
    %45 = arith.cmpi ne, %44, %c0_i32_15 : i32
    scf.if %45 {
      %c0_16 = arith.constant 0 : index
      %c0_17 = arith.constant 0 : index
      %46 = vector.load %arg8[%c0_16, %c0_17] : memref<64x128xf32, #tpu.memory_space<vmem>>, vector<64x128xf32>
      %cst_18 = arith.constant 0.000000e+00 : f32
      %47 = vector.broadcast %cst_18 : f32 to vector<64x1xf32>
      %48 = arith.maximumf %7, %47 : vector<64x1xf32>
      %cst_19 = arith.constant 7.500000e-01 : f32
      %49 = vector.broadcast %cst_19 : f32 to vector<64x1xf32>
      %50 = arith.mulf %49, %48 : vector<64x1xf32>
      %51 = vector.broadcast %50 : vector<64x1xf32> to vector<64x128xf32>
      %52 = arith.subf %46, %51 : vector<64x128xf32>
      %cst_20 = arith.constant dense<0.000000e+00> : vector<64xf32>
      %53 = vector.multi_reduction <add>, %52, %cst_20 [1] : vector<64x128xf32> to vector<64xf32>
      %cst_21 = arith.constant 6.37755089E-4 : f32
      %54 = vector.broadcast %cst_21 : f32 to vector<64xf32>
      %55 = arith.mulf %53, %54 : vector<64xf32>
      %56 = vector.shape_cast %55 : vector<64xf32> to vector<1x64xf32>
      %c0_22 = arith.constant 0 : index
      %c0_23 = arith.constant 0 : index
      %57 = vector.load %arg5[%c0_22, %c0_23] : memref<64x2560xf32, #tpu.memory_space<vmem>>, vector<64x2560xf32>
      %cst_24 = arith.constant dense<0.000000e+00> : vector<1x2560xf32>
      %58 = tpu.matmul %56, %57, %cst_24 {dimension_numbers = #tpu.dot_dimension_numbers<[1], [0], [0], [1], [0, 0, 1, 1], [], []>} : vector<1x64xf32>, vector<64x2560xf32>, vector<1x2560xf32> -> vector<1x2560xf32>
      %c0_25 = arith.constant 0 : index
      %c0_26 = arith.constant 0 : index
      %59 = vector.load %arg6[%c0_25, %c0_26] : memref<1x2560xf32, #tpu.memory_space<vmem>>, vector<1x2560xf32>
      %60 = arith.addf %58, %59 : vector<1x2560xf32>
      %c0_27 = arith.constant 0 : index
      %c0_28 = arith.constant 0 : index
      %c0_29 = arith.constant 0 : index
      %61 = vector.load %arg7[%c0_27, %c0_28, %c0_29] : memref<1x1x2560xf32, #tpu.memory_space<vmem>>, vector<1x1x2560xf32>
      %62 = vector.shape_cast %61 : vector<1x1x2560xf32> to vector<1x2560xf32>
      %63 = vector.shape_cast %60 : vector<1x2560xf32> to vector<1x1x2560xf32>
      tpu.vector_store %arg7[%c0_27, %c0_28, %c0_29], %63 {strides = array<i32>} : memref<1x1x2560xf32, #tpu.memory_space<vmem>>, vector<1x1x2560xf32>,
    } else {
    }
    return
  }
  func.func @transform_0(%arg0: i32, %arg1: i32) -> (i32, i32, i32) {
    %c0_i32 = arith.constant 0 : i32
    %c0_i32_0 = arith.constant 0 : i32
    return %arg0, %c0_i32, %arg1 : i32, i32, i32
  }
  func.func @transform_1(%arg0: i32, %arg1: i32) -> (i32, i32) {
    %c0_i32 = arith.constant 0 : i32
    %c0_i32_0 = arith.constant 0 : i32
    %c0_i32_1 = arith.constant 0 : i32
    return %c0_i32, %c0_i32_0 : i32, i32
  }
  func.func @transform_2(%arg0: i32, %arg1: i32) -> (i32, i32) {
    %c0_i32 = arith.constant 0 : i32
    %c0_i32_0 = arith.constant 0 : i32
    %c0_i32_1 = arith.constant 0 : i32
    return %c0_i32, %c0_i32_0 : i32, i32
  }
  func.func @transform_3(%arg0: i32, %arg1: i32) -> (i32, i32) {
    %c0_i32 = arith.constant 0 : i32
    %c0_i32_0 = arith.constant 0 : i32
    %c0_i32_1 = arith.constant 0 : i32
    return %c0_i32, %c0_i32_0 : i32, i32
  }
  func.func @transform_4(%arg0: i32, %arg1: i32) -> (i32, i32) {
    %c0_i32 = arith.constant 0 : i32
    %c0_i32_0 = arith.constant 0 : i32
    %c0_i32_1 = arith.constant 0 : i32
    return %c0_i32, %c0_i32_0 : i32, i32
  }
  func.func @transform_5(%arg0: i32, %arg1: i32) -> (i32, i32, i32) {
    %c0_i32 = arith.constant 0 : i32
    %c0_i32_0 = arith.constant 0 : i32
    %c0_i32_1 = arith.constant 0 : i32
    return %arg0, %c0_i32, %c0_i32_0 : i32, i32, i32
  }
}

</mosaic_0001>

<bundles_post_ra>
// kernel: forward.1
= control target key start
LH: loop header
LB: loop body
LE: loop exit
PB: predicated region body
PF: predicated region fallthrough
CT: control target
= control target key end

     0   :  { %s2284_s18 = smov 0   ;;  %s2286_s19 = smov 0   ;;  %s3427_s0 = inlined_call_operand.vmem [shape: f32[2,3,1568], index: 0, kind: input, shape index: {}]   ;;  %s3428_s1 = inlined_call_operand.vmem [shape: f32[64,3], index: 1, kind: input, shape index: {}]   ;;  %s3429_s2 = inlined_call_operand.vmem [shape: f32[64,1], index: 2, kind: input, shape index: {}]   ;;  %s3430_s3 = inlined_call_operand.vmem [shape: f32[64,2560], index: 3, kind: input, shape index: {}]   ;;  %s3431_s4 = inlined_call_operand.vmem [shape: f32[1,2560], index: 4, kind: input, shape index: {}]   ;;  %s3432_s5 = inlined_call_operand.vmem [shape: f32[2,1,2560], index: 5, kind: output, shape index: {}]  }
   0x1   :  { %s2288_s20 = smov 0  }
   0x2 LB: > { %s27_s21 = sadd.s32 1, %s2246_s19  ;;  %p2056_p0 = scmp.ge.s32.totalorder %s2250_s20, 1  ;;  %s2250_s20 = sphi %s2288_s20, %s15_s20   ;;  %s2246_s19 = sphi %s2286_s19, %s3454_s19   ;;  %s2242_s18 = sphi %s2284_s18, %s3453_s18  }
   0x3   : > { %p29_p1 = scmp.ge.s32.totalorder %s27_s21, 2  ;;  %p206_p2 = scmp.lt.s32.totalorder %s2250_s20, 3 }
   0x5   : > { %s3456_s21 = smov (%p29_p1, %s27_s21), 0  ;;  %p207_p3 = pnand %p2056_p0, %p206_p2 }
   0x7   : > { %210 = sbr.rel (%p207_p3) target bundleno = 742 (0x2e6), region = 40 }
   0xc   : > { %p238_p4 = scmp.lt.s32.totalorder %s2242_s18, 1  ;;  %v2252_v0 = vmov 0   ;;  %v2305_v1 = vld [vmem:[%s3429_s2] sm:$0xff]  ;;  %v274_v4 = vld [vmem:[%s3429_s2 + $0x8] sm:$0xff]  ;;  %v2325_v6 = vld [vmem:[%s3429_s2 + $0x10] sm:$0xff]  ;;  %vm383_vm0 = vcmask 1042432  }
   0xd   : > { %2225 = vset.pattern.permute.xlu0 %v2252_v0  ;;  %2226 = vset.pattern.permute.xlu1 %v2252_v0  ;;  %v2333_v9 = vld [vmem:[%s3428_s1] sm:$0xff]  ;;  %vm358_vm1 = vcmask 23552   ;;  %v2350_v15 = vld [vmem:[%s3429_s2 + $0x18] sm:$0xff]  ;;  %v2357_v16 = vld [vmem:[%s3428_s1 + $0x8] sm:$0xff]  ;;  %vm263_vm2 = vcmask 1042688   ;;  %v1179_v22 = vmax.f32 %v274_v4, 0.0 }
   0xe   : > { %s3458_s18 = smov (!%p238_p4, %s2242_s18), 1  ;;  %290 = vperm.xlu0 %2225, %v2305_v1   ;;  %2227 = vset.pattern.permute.xlu2 %v2252_v0  ;;  %v2370_v17 = vld [vmem:[%s3428_s1 + $0x10] sm:$0xff]  ;;  %v2383_v18 = vld [vmem:[%s3428_s1 + $0x18] sm:$0xff]  ;;  %v2253_v23 = vmov 0.0   ;;  %v2405_v24 = vld [vmem:[%s3428_s1 + $0x20] sm:$0xff]  ;;  %v1180_v31 = vmax.f32 %v2325_v6, 0.0 }
   0xf   : > { %s2197_s24 = smul.u32 52, %s3458_s18  ;;  %300 = vperm.xlu1 %2226, %v2325_v6   ;;  %v2397_v20 = vld [vmem:[%s3429_s2 + $0x30] sm:$0xff]  ;;  %v1187_v25 = vmul.f32 0.75, %v1179_v22  ;;  %v277_v29 = vld [vmem:[%s3429_s2 + $0x20] sm:$0xff]  ;;  %v280_v30 = vld [vmem:[%s3429_s2 + $0x38] sm:$0xff]  ;;  %v1178_v37 = vmax.f32 %v2305_v1, 0.0 }
  0x10   : > { %310 = vperm.xlu2 %2227, %v277_v29   ;;  %v1182_v32 = vmax.f32 %v277_v29, 0.0  ;;  %v2428_v33 = vld [vmem:[%s3428_s1 + $0x28] sm:$0xff]  ;;  %v1188_v34 = vmul.f32 0.75, %v1180_v31  ;;  %v1185_v38 = vmax.f32 %v280_v30, 0.0  ;;  %v2445_v40 = vld [vmem:[%s3428_s1 + $0x30] sm:$0xff]  ;;  %v1181_v45 = vmax.f32 %v2350_v15, 0.0 }
  0x11   : > { %s2314_s27 = scalar_lea.vmem %s3427_s0, %s2197_s24  ;;  %v278_v36 = vld [vmem:[%s3429_s2 + $0x28] sm:$0xff]  ;;  %v1186_v41 = vmul.f32 0.75, %v1178_v37  ;;  %v2460_v46 = vld [vmem:[%s3428_s1 + $0x38] sm:$0xff]  ;;  %v1184_v48 = vmax.f32 %v2397_v20, 0.0  ;;  %vm1442_vm3 = vcmask 130112   ;;  %vm1446_vm4 = vcmask 195712  }
  0x12   : > { %v281_v2 = vld [vmem:[%s2314_s27] sm:$0x77]  ;;  %v282_v3 = vld [vmem:[%s2314_s27 + $0x8] sm:$0x77]  ;;  %v283_v5 = vld [vmem:[%s2314_s27 + $0x10] sm:$0x77] }
  0x13   : > { %335 = vst [vmem:[#allocation1] ss:$2 sm:$0xff] %v281_v2  ;;  %v285_v7 = vld [vmem:[%s2314_s27 + $0x20] sm:$0x77]  ;;  %v286_v8 = vld [vmem:[%s2314_s27 + $0x28] sm:$0x77] }
  0x14   : > { %337 = vst [vmem:[#allocation1 + $0x10] ss:$2 sm:$0xff] %v282_v3  ;;  %v284_v19 = vld [vmem:[%s2314_s27 + $0x18] sm:$0x77]  ;;  %v1190_v35 = vmul.f32 0.75, %v1182_v32  ;;  %v1183_v39 = vmax.f32 %v278_v36, 0.0 }
  0x15   : > { %339 = vst [vmem:[#allocation1 + $0x20] ss:$2 sm:$0xff] %v283_v5  ;;  %v1193_v42 = vmul.f32 0.75, %v1185_v38  ;;  %v1189_v47 = vmul.f32 0.75, %v1181_v45  ;;  %v1192_v49 = vmul.f32 0.75, %v1184_v48  ;;  %vm1450_vm5 = vcmask 261312  }
  0x16   : > { %295 = vperm.xlu0 %2225, %v274_v4   ;;  %341 = vst [vmem:[#allocation1 + $0x30] ss:$2 sm:$0xff] %v284_v19  ;;  %v1191_v43 = vmul.f32 0.75, %v1183_v39  ;;  %vm1454_vm6 = vcmask 326912   ;;  %vm1458_vm7 = vcmask 392512   ;;  %vm1462_vm8 = vcmask 458112  }
  0x17   : > { %305 = vperm.xlu1 %2226, %v2350_v15   ;;  %264 = vst.msk [vmem:[%s2314_s27 + $0x30] sm:$0x7] %vm263_vm2, %v2253_v23  ;;  %vm1466_vm9 = vcmask 523712   ;;  %vm1511_vm10 = vcmask 523264   ;;  %vm1951_vm11 = vcmask 1040384   ;;  %vm1953_vm12 = vcmask 1042434  }
  0x18   : > { %315 = vperm.xlu2 %2227, %v278_v36   ;;  %s2198_s23 = smul.u32 20, %s3458_s18  ;;  %vm1955_vm13 = vcmask 1041408   ;;  %vm1957_vm14 = vcmask 1044484   ;;  %vm1959_vm15 = vcmask 1046534  }
  0x1a   : > { %v342_v10 = vld.sshfl [vmem:[#allocation1] sm:$0xff pattern:$0x75316420]  ;;  %v343_v11 = vld.sshfl [vmem:[#allocation1 + $0x8] sm:$0xff pattern:$0x75316420]  ;;  %s3392_s26 = scalar_lea.vmem %s3432_s5, %s2198_s23 }
  0x1b   : > { %2058 = vmatpush.msk.msra.mxu0 %vm383_vm0, %v342_v10  ;;  %350 = vst [vmem:[#allocation1] ss:$2 sm:$0xff] %v285_v7  ;;  %2067 = vmatpush.msk.msra.mxu1 %vm383_vm0, %v343_v11  ;;  %v344_v12 = vld.sshfl [vmem:[#allocation1 + $0x10] sm:$0xff pattern:$0x75316420] }
  0x1c   : > { %2076 = vmatpush.msk.msra.mxu2 %vm383_vm0, %v344_v12  ;;  %v345_v13 = vld.sshfl [vmem:[#allocation1 + $0x18] sm:$0xff pattern:$0x75316420]  ;;  %2059 = vmatmul.msk.f32.vlgmr.msra.gmra.mxu0 %vm358_vm1, %v2333_v9  ;;  %v346_v14 = vld.sshfl [vmem:[#allocation1 + $0x20] sm:$0xff pattern:$0x75316420] }
  0x1d   : > { %351 = vst [vmem:[#allocation1 + $0x10] ss:$2 sm:$0xff] %v286_v8  ;;  %2085 = vmatpush.msk.msra.mxu3 %vm383_vm0, %v345_v13  ;;  %2068 = vmatmul.msk.f32.vlgmr.msra.gmra.mxu1 %vm358_vm1, %v2333_v9  ;;  %v347_v21 = vld.sshfl [vmem:[#allocation1 + $0x28] sm:$0xff pattern:$0x75316420] }
  0x1e   : > { %2077 = vmatmul.msk.f32.vlgmr.msra.gmra.mxu2 %vm358_vm1, %v2333_v9  ;;  %2086 = vmatmul.msk.f32.vlgmr.msra.gmra.mxu3 %vm358_vm1, %v2333_v9  ;;  %v348_v26 = vld.sshfl [vmem:[#allocation1 + $0x30] sm:$0xff pattern:$0x75316420]  ;;  %v349_v27 = vld.sshfl [vmem:[#allocation1 + $0x38] sm:$0xff pattern:$0x75316420] }
  0x1f   : > { %2094 = vmatpush.msk.msrb.mxu0 %vm383_vm0, %v346_v14  ;;  %320 = vperm.xlu0 %2225, %v2397_v20   ;;  %v287_v28 = vld [vmem:[%s2314_s27 + $0x30] sm:$0x7] }
  0x20   : > { %2103 = vmatpush.msk.msrb.mxu1 %vm383_vm0, %v347_v21  ;;  %2112 = vmatpush.msk.msrb.mxu2 %vm383_vm0, %v348_v26  ;;  %352 = vst [vmem:[#allocation1 + $0x20] ss:$2 sm:$0xff] %v287_v28 }
  0x21   : > { %2121 = vmatpush.msk.msrb.mxu3 %vm383_vm0, %v349_v27  ;;  %325 = vperm.xlu1 %2226, %v280_v30  }
  0x22   : > { %v353_v44 = vld.sshfl [vmem:[#allocation1] sm:$0xff pattern:$0x75316420]  ;;  %1196 = vperm.xlu2 %2227, %v1186_v41   ;;  %v354_v50 = vld.sshfl [vmem:[#allocation1 + $0x8] sm:$0xff pattern:$0x75316420] }
  0x23   : > { %2130 = vmatpush.msk.msra.mxu0 %vm383_vm0, %v353_v44  ;;  %2139 = vmatpush.msk.msra.mxu1 %vm383_vm0, %v354_v50 }
  0x24   : > { %2060 = vmatmul.msk.f32.gmra.mxu0 %vm358_vm1, %v2357_v16  ;;  %v355_v51 = vld.sshfl [vmem:[#allocation1 + $0x10] sm:$0xff pattern:$0x75316420]  ;;  %v356_v52 = vld.sshfl [vmem:[#allocation1 + $0x18] sm:$0xff pattern:$0x75316420] }
  0x25   : > { %2069 = vmatmul.msk.f32.gmra.mxu1 %vm358_vm1, %v2357_v16  ;;  %2148 = vmatpush.msk.msra.mxu2 %vm383_vm0, %v355_v51 }
  0x26   : > { %2078 = vmatmul.msk.f32.gmra.mxu2 %vm358_vm1, %v2357_v16  ;;  %2087 = vmatmul.msk.f32.gmra.mxu3 %vm358_vm1, %v2357_v16 }
  0x27   : > { %1201 = vperm.xlu0 %2225, %v1187_v25   ;;  %2157 = vmatpush.msk.msra.mxu3 %vm383_vm0, %v356_v52  ;;  %v357_v53 = vld.sshfl [vmem:[#allocation1 + $0x20] sm:$0xff pattern:$0x75316420] }
  0x29   : > { %1206 = vperm.xlu1 %2226, %v1188_v34  }
  0x2a   : > { %1211 = vperm.xlu2 %2227, %v1189_v47  }
  0x2c   : > { %2061 = vmatmul.msk.f32.gmra.mxu0 %vm358_vm1, %v2370_v17 }
  0x2d   : > { %2070 = vmatmul.msk.f32.gmra.mxu1 %vm358_vm1, %v2370_v17 }
  0x2e   : > { %2079 = vmatmul.msk.f32.gmra.mxu2 %vm358_vm1, %v2370_v17  ;;  %2088 = vmatmul.msk.f32.gmra.mxu3 %vm358_vm1, %v2370_v17 }
  0x2f   : > { %1216 = vperm.xlu0 %2225, %v1190_v35  }
  0x31   : > { %1221 = vperm.xlu1 %2226, %v1191_v43  }
  0x32   : > { %1226 = vperm.xlu2 %2227, %v1192_v49  }
  0x34   : > { %2062 = vmatmul.msk.f32.gmra.mxu0 %vm358_vm1, %v2383_v18 }
  0x35   : > { %2071 = vmatmul.msk.f32.gmra.mxu1 %vm358_vm1, %v2383_v18 }
  0x36   : > { %2080 = vmatmul.msk.f32.gmra.mxu2 %vm358_vm1, %v2383_v18  ;;  %2089 = vmatmul.msk.f32.gmra.mxu3 %vm358_vm1, %v2383_v18 }
  0x37   : > { %1231 = vperm.xlu0 %2225, %v1193_v42  }
  0x3c   : > { %2063 = vmatmul.msk.f32.gmra.mxu0 %vm358_vm1, %v2405_v24 }
  0x3d   : > { %2072 = vmatmul.msk.f32.gmra.mxu1 %vm358_vm1, %v2405_v24 }
  0x3e   : > { %2081 = vmatmul.msk.f32.gmra.mxu2 %vm358_vm1, %v2405_v24  ;;  %2090 = vmatmul.msk.f32.gmra.mxu3 %vm358_vm1, %v2405_v24 }
  0x44   : > { %2064 = vmatmul.msk.f32.gmra.mxu0 %vm358_vm1, %v2428_v33 }
  0x45   : > { %2073 = vmatmul.msk.f32.gmra.mxu1 %vm358_vm1, %v2428_v33 }
  0x46   : > { %2082 = vmatmul.msk.f32.gmra.mxu2 %vm358_vm1, %v2428_v33  ;;  %2091 = vmatmul.msk.f32.gmra.mxu3 %vm358_vm1, %v2428_v33 }
  0x4c   : > { %2065 = vmatmul.msk.f32.gmra.mxu0 %vm358_vm1, %v2445_v40 }
  0x4d   : > { %2074 = vmatmul.msk.f32.gmra.mxu1 %vm358_vm1, %v2445_v40 }
  0x4e   : > { %2083 = vmatmul.msk.f32.gmra.mxu2 %vm358_vm1, %v2445_v40  ;;  %2092 = vmatmul.msk.f32.gmra.mxu3 %vm358_vm1, %v2445_v40 }
  0x54   : > { %2066 = vmatmul.msk.f32.gmra.mxu0 %vm358_vm1, %v2460_v46 }
  0x55   : > { %2075 = vmatmul.msk.f32.gmra.mxu1 %vm358_vm1, %v2460_v46 }
  0x56   : > { %2084 = vmatmul.msk.f32.gmra.mxu2 %vm358_vm1, %v2460_v46  ;;  %2093 = vmatmul.msk.f32.gmra.mxu3 %vm358_vm1, %v2460_v46 }
  0x5c   : > { %2095 = vmatmul.msk.f32.vlgmr.msrb.gmra.mxu0 %vm358_vm1, %v2333_v9 }
  0x5d   : > { %2104 = vmatmul.msk.f32.vlgmr.msrb.gmra.mxu1 %vm358_vm1, %v2333_v9  ;;  %2166 = vmatpush.msk.msrb.mxu0 %vm383_vm0, %v357_v53  ;;  %vm1961_vm0 = vcmask 1045508  }
  0x5e   : > { %2113 = vmatmul.msk.f32.vlgmr.msrb.gmra.mxu2 %vm358_vm1, %v2333_v9  ;;  %2122 = vmatmul.msk.f32.vlgmr.msrb.gmra.mxu3 %vm358_vm1, %v2333_v9 }
  0x64   : > { %2096 = vmatmul.msk.f32.gmra.mxu0 %vm358_vm1, %v2357_v16 }
  0x65   : > { %2105 = vmatmul.msk.f32.gmra.mxu1 %vm358_vm1, %v2357_v16 }
  0x66   : > { %2114 = vmatmul.msk.f32.gmra.mxu2 %vm358_vm1, %v2357_v16  ;;  %2123 = vmatmul.msk.f32.gmra.mxu3 %vm358_vm1, %v2357_v16 }
  0x6c   : > { %2097 = vmatmul.msk.f32.gmra.mxu0 %vm358_vm1, %v2370_v17 }
  0x6d   : > { %2106 = vmatmul.msk.f32.gmra.mxu1 %vm358_vm1, %v2370_v17 }
  0x6e   : > { %2115 = vmatmul.msk.f32.gmra.mxu2 %vm358_vm1, %v2370_v17  ;;  %2124 = vmatmul.msk.f32.gmra.mxu3 %vm358_vm1, %v2370_v17 }
  0x74   : > { %2098 = vmatmul.msk.f32.gmra.mxu0 %vm358_vm1, %v2383_v18 }
  0x75   : > { %2107 = vmatmul.msk.f32.gmra.mxu1 %vm358_vm1, %v2383_v18 }
  0x76   : > { %2116 = vmatmul.msk.f32.gmra.mxu2 %vm358_vm1, %v2383_v18  ;;  %2125 = vmatmul.msk.f32.gmra.mxu3 %vm358_vm1, %v2383_v18 }
  0x7c   : > { %2099 = vmatmul.msk.f32.gmra.mxu0 %vm358_vm1, %v2405_v24 }
  0x7d   : > { %2108 = vmatmul.msk.f32.gmra.mxu1 %vm358_vm1, %v2405_v24 }
  0x7e   : > { %2117 = vmatmul.msk.f32.gmra.mxu2 %vm358_vm1, %v2405_v24  ;;  %2126 = vmatmul.msk.f32.gmra.mxu3 %vm358_vm1, %v2405_v24 }
  0x80   : > { %v2595_v4 = vpop.permute.xlu0 %290 }
  0x81   : > { %v2619_v11 = vpop.permute.xlu1 %300 }
  0x84   : > { %2100 = vmatmul.msk.f32.gmra.mxu0 %vm358_vm1, %v2428_v33 }
  0x85   : > { %2109 = vmatmul.msk.f32.gmra.mxu1 %vm358_vm1, %v2428_v33 }
  0x86   : > { %2118 = vmatmul.msk.f32.gmra.mxu2 %vm358_vm1, %v2428_v33  ;;  %2127 = vmatmul.msk.f32.gmra.mxu3 %vm358_vm1, %v2428_v33 }
  0x88   : > { %v2617_v10 = vpop.permute.xlu0 %295 }
  0x89   : > { %v2643_v25 = vpop.permute.xlu1 %305 }
  0x8c   : > { %2101 = vmatmul.msk.f32.gmra.mxu0 %vm358_vm1, %v2445_v40 }
  0x8d   : > { %2110 = vmatmul.msk.f32.gmra.mxu1 %vm358_vm1, %v2445_v40 }
  0x8e   : > { %2119 = vmatmul.msk.f32.gmra.mxu2 %vm358_vm1, %v2445_v40  ;;  %2128 = vmatmul.msk.f32.gmra.mxu3 %vm358_vm1, %v2445_v40 }
  0x91   : > { %v2637_v19 = vpop.permute.xlu0 %320 }
  0x92   : > { %3437 = vst [vmem:[#allocation3_spill] sm:$0xff] %v2637_v19 }
  0x93   : > { %v2657_v37 = vpop.permute.xlu1 %325 }
  0x94   : > { %2102 = vmatmul.msk.f32.gmra.mxu0 %vm358_vm1, %v2460_v46  ;;  %3438 = vst [vmem:[#allocation4_spill] sm:$0xff] %v2657_v37 }
  0x95   : > { %2111 = vmatmul.msk.f32.gmra.mxu1 %vm358_vm1, %v2460_v46 }
  0x96   : > { %2120 = vmatmul.msk.f32.gmra.mxu2 %vm358_vm1, %v2460_v46  ;;  %2129 = vmatmul.msk.f32.gmra.mxu3 %vm358_vm1, %v2460_v46 }
  0x99   : > { %v2538_v54 = vpop.f32.mrf.mxu0 }
  0x9a   : > { %v2541_v55 = vpop.f32.mrf.mxu1 }
  0x9c   : > { %2131 = vmatmul.msk.f32.vlgmr.msra.gmra.mxu0 %vm358_vm1, %v2333_v9 }
  0x9d   : > { %2140 = vmatmul.msk.f32.vlgmr.msra.gmra.mxu1 %vm358_vm1, %v2333_v9 }
  0x9e   : > { %2149 = vmatmul.msk.f32.vlgmr.msra.gmra.mxu2 %vm358_vm1, %v2333_v9  ;;  %2158 = vmatmul.msk.f32.vlgmr.msra.gmra.mxu3 %vm358_vm1, %v2333_v9 }
  0xa1   : > { %v2551_v56 = vpop.f32.mrf.mxu2  ;;  %v2553_v57 = vpop.f32.mrf.mxu3 }
  0xa2   : > { %v2555_v58 = vpop.f32.mrf.mxu0  ;;  %v2557_v59 = vpop.f32.mrf.mxu1 }
  0xa4   : > { %2132 = vmatmul.msk.f32.gmra.mxu0 %vm358_vm1, %v2357_v16 }
  0xa5   : > { %2141 = vmatmul.msk.f32.gmra.mxu1 %vm358_vm1, %v2357_v16 }
  0xa6   : > { %2150 = vmatmul.msk.f32.gmra.mxu2 %vm358_vm1, %v2357_v16  ;;  %2159 = vmatmul.msk.f32.gmra.mxu3 %vm358_vm1, %v2357_v16 }
  0xa9   : > { %v2567_v60 = vpop.f32.mrf.mxu2  ;;  %v2569_v61 = vpop.f32.mrf.mxu3 }
  0xaa   : > { %v2571_v62 = vpop.f32.mrf.mxu0  ;;  %v2573_v63 = vpop.f32.mrf.mxu1 }
  0xac   : > { %2133 = vmatmul.msk.f32.gmra.mxu0 %vm358_vm1, %v2370_v17 }
  0xad   : > { %2142 = vmatmul.msk.f32.gmra.mxu1 %vm358_vm1, %v2370_v17 }
  0xae   : > { %2151 = vmatmul.msk.f32.gmra.mxu2 %vm358_vm1, %v2370_v17  ;;  %2160 = vmatmul.msk.f32.gmra.mxu3 %vm358_vm1, %v2370_v17 }
  0xb1   : > { %v2583_v0 = vpop.f32.mrf.mxu2  ;;  %v2585_v1 = vpop.f32.mrf.mxu3 }
  0xb2   : > { %v2587_v2 = vpop.f32.mrf.mxu0  ;;  %v2589_v3 = vpop.f32.mrf.mxu1 }
  0xb4   : > { %2134 = vmatmul.msk.f32.gmra.mxu0 %vm358_vm1, %v2383_v18 }
  0xb5   : > { %2143 = vmatmul.msk.f32.gmra.mxu1 %vm358_vm1, %v2383_v18 }
  0xb6   : > { %2152 = vmatmul.msk.f32.gmra.mxu2 %vm358_vm1, %v2383_v18  ;;  %2161 = vmatmul.msk.f32.gmra.mxu3 %vm358_vm1, %v2383_v18 }
  0xb9   : > { %v2601_v5 = vpop.f32.mrf.mxu2  ;;  %v2603_v6 = vpop.f32.mrf.mxu3 }
  0xba   : > { %v2605_v7 = vpop.f32.mrf.mxu0  ;;  %v2607_v8 = vpop.f32.mrf.mxu1 }
  0xbc   : > { %2135 = vmatmul.msk.f32.gmra.mxu0 %vm358_vm1, %v2405_v24 }
  0xbd   : > { %2144 = vmatmul.msk.f32.gmra.mxu1 %vm358_vm1, %v2405_v24 }
  0xbe   : > { %2153 = vmatmul.msk.f32.gmra.mxu2 %vm358_vm1, %v2405_v24  ;;  %2162 = vmatmul.msk.f32.gmra.mxu3 %vm358_vm1, %v2405_v24 }
  0xc1   : > { %v2621_v12 = vpop.f32.mrf.mxu2  ;;  %v2623_v13 = vpop.f32.mrf.mxu3 }
  0xc2   : > { %v2625_v14 = vpop.f32.mrf.mxu0  ;;  %v2627_v15 = vpop.f32.mrf.mxu1 }
  0xc4   : > { %2136 = vmatmul.msk.f32.gmra.mxu0 %vm358_vm1, %v2428_v33 }
  0xc5   : > { %2145 = vmatmul.msk.f32.gmra.mxu1 %vm358_vm1, %v2428_v33 }
  0xc6   : > { %2154 = vmatmul.msk.f32.gmra.mxu2 %vm358_vm1, %v2428_v33  ;;  %2163 = vmatmul.msk.f32.gmra.mxu3 %vm358_vm1, %v2428_v33 }
  0xc9   : > { %v2639_v20 = vpop.f32.mrf.mxu2  ;;  %v2641_v21 = vpop.f32.mrf.mxu3 }
  0xca   : > { %v445_v22 = vpop.f32.mrf.mxu0  ;;  %v486_v23 = vpop.f32.mrf.mxu1 }
  0xcb   : > { %v446_v26 = vadd.f32 %v445_v22, %v2637_v19  ;;  %v487_v27 = vadd.f32 %v486_v23, %v2637_v19 }
  0xcc   : > { %2137 = vmatmul.msk.f32.gmra.mxu0 %vm358_vm1, %v2445_v40 }
  0xcd   : > { %2146 = vmatmul.msk.f32.gmra.mxu1 %vm358_vm1, %v2445_v40  ;;  %v1021_v28 = vmax.f32 %v446_v26, 0.0  ;;  %v1022_v29 = vmax.f32 %v487_v27, 0.0 }
  0xce   : > { %2155 = vmatmul.msk.f32.gmra.mxu2 %vm358_vm1, %v2445_v40  ;;  %2164 = vmatmul.msk.f32.gmra.mxu3 %vm358_vm1, %v2445_v40 }
  0xcf   : > { %v1053_v41 = vadd.f32 %v1022_v29, %v1021_v28 }
  0xd1   : > { %v527_v30 = vpop.f32.mrf.mxu2  ;;  %v568_v31 = vpop.f32.mrf.mxu3 }
  0xd2   : > { %v528_v32 = vadd.f32 %v527_v30, %v2637_v19  ;;  %v569_v34 = vadd.f32 %v568_v31, %v2637_v19  ;;  %v448_v35 = vpop.f32.mrf.mxu0  ;;  %v489_v36 = vpop.f32.mrf.mxu1 }
  0xd3   : > { %v449_v43 = vadd.f32 %v448_v35, %v2657_v37  ;;  %v490_v44 = vadd.f32 %v489_v36, %v2657_v37 }
  0xd4   : > { %v1023_v38 = vmax.f32 %v528_v32, 0.0  ;;  %v1024_v39 = vmax.f32 %v569_v34, 0.0  ;;  %2138 = vmatmul.msk.f32.gmra.mxu0 %vm358_vm1, %v2460_v46 }
  0xd5   : > { %2147 = vmatmul.msk.f32.gmra.mxu1 %vm358_vm1, %v2460_v46  ;;  %v1034_v49 = vmax.f32 %v449_v43, 0.0  ;;  %v1035_v50 = vmax.f32 %v490_v44, 0.0 }
  0xd6   : > { %v1061_v42 = vadd.f32 %v1024_v39, %v1023_v38  ;;  %2156 = vmatmul.msk.f32.gmra.mxu2 %vm358_vm1, %v2460_v46  ;;  %2165 = vmatmul.msk.f32.gmra.mxu3 %vm358_vm1, %v2460_v46 }
  0xd7   : > { %v1054_v27 = vadd.f32 %v1035_v50, %v1034_v49 }
  0xd8   : > { %v2669_v45 = vadd.f32 %v1061_v42, %v1053_v41 }
  0xd9   : > { %v530_v47 = vpop.f32.mrf.mxu2  ;;  %v571_v48 = vpop.f32.mrf.mxu3 }
  0xda   : > { %v531_v51 = vadd.f32 %v530_v47, %v2657_v37  ;;  %v572_v52 = vadd.f32 %v571_v48, %v2657_v37  ;;  %v591_v53 = vpop.f32.mrf.mxu0  ;;  %v632_v22 = vpop.f32.mrf.mxu1 }
  0xdb   : > { %v592_v29 = vadd.f32 %v591_v53, %v2595_v4  ;;  %v633_v30 = vadd.f32 %v632_v22, %v2595_v4 }
  0xdc   : > { %v1036_v23 = vmax.f32 %v531_v51, 0.0  ;;  %v1037_v26 = vmax.f32 %v572_v52, 0.0  ;;  %2167 = vmatmul.msk.f32.vlgmr.msrb.gmra.mxu0 %vm358_vm1, %v2333_v9 }
  0xdd   : > { %v947_v35 = vmax.f32 %v592_v29, 0.0  ;;  %v948_v36 = vmax.f32 %v633_v30, 0.0 }
  0xde   : > { %v1062_v28 = vadd.f32 %v1037_v26, %v1036_v23 }
  0xdf   : > { %v1063_v44 = vadd.f32 %v948_v36, %v947_v35 }
  0xe0   : > { %v2677_v31 = vadd.f32 %v1062_v28, %v1054_v27 }
  0xe1   : > { %v673_v32 = vpop.f32.mrf.mxu2  ;;  %v714_v34 = vpop.f32.mrf.mxu3 }
  0xe2   : > { %v674_v38 = vadd.f32 %v673_v32, %v2595_v4  ;;  %v715_v39 = vadd.f32 %v714_v34, %v2595_v4  ;;  %v594_v41 = vpop.f32.mrf.mxu0  ;;  %v635_v42 = vpop.f32.mrf.mxu1 }
  0xe3   : > { %v595_v48 = vadd.f32 %v594_v41, %v2617_v10  ;;  %v636_v49 = vadd.f32 %v635_v42, %v2617_v10 }
  0xe4   : > { %v949_v43 = vmax.f32 %v674_v38, 0.0  ;;  %v950_v9 = vmax.f32 %v715_v39, 0.0  ;;  %2168 = vmatmul.msk.f32.gmra.mxu0 %vm358_vm1, %v2357_v16 }
  0xe5   : > { %v960_v53 = vmax.f32 %v595_v48, 0.0  ;;  %v961_v22 = vmax.f32 %v636_v49, 0.0 }
  0xe6   : > { %v1071_v47 = vadd.f32 %v950_v9, %v949_v43 }
  0xe7   : > { %v1064_v36 = vadd.f32 %v961_v22, %v960_v53 }
  0xe8   : > { %v2685_v50 = vadd.f32 %v1071_v47, %v1063_v44 }
  0xe9   : > { %v676_v51 = vpop.f32.mrf.mxu2  ;;  %v717_v52 = vpop.f32.mrf.mxu3 }
  0xea   : > { %v677_v23 = vadd.f32 %v676_v51, %v2617_v10  ;;  %v718_v26 = vadd.f32 %v717_v52, %v2617_v10  ;;  %v597_v27 = vpop.f32.mrf.mxu0  ;;  %v638_v28 = vpop.f32.mrf.mxu1 }
  0xeb   : > { %v598_v16 = vadd.f32 %v597_v27, %v2619_v11  ;;  %v639_v29 = vadd.f32 %v638_v28, %v2619_v11 }
  0xec   : > { %v962_v30 = vmax.f32 %v677_v23, 0.0  ;;  %v963_v32 = vmax.f32 %v718_v26, 0.0  ;;  %2169 = vmatmul.msk.f32.gmra.mxu0 %vm358_vm1, %v2370_v17  ;;  %v2701_v23 = vpop.permute.xlu2 %310 }
  0xed   : > { %v973_v34 = vmax.f32 %v598_v16, 0.0  ;;  %v974_v35 = vmax.f32 %v639_v29, 0.0 }
  0xee   : > { %v1072_v38 = vadd.f32 %v963_v32, %v962_v30 }
  0xef   : > { %v1065_v39 = vadd.f32 %v974_v35, %v973_v34 }
  0xf0   : > { %v2693_v41 = vadd.f32 %v1072_v38, %v1064_v36 }
  0xf1   : > { %v679_v42 = vpop.f32.mrf.mxu2  ;;  %v720_v43 = vpop.f32.mrf.mxu3 }
  0xf2   : > { %v680_v9 = vadd.f32 %v679_v42, %v2619_v11  ;;  %v721_v44 = vadd.f32 %v720_v43, %v2619_v11  ;;  %v600_v47 = vpop.f32.mrf.mxu0  ;;  %v641_v48 = vpop.f32.mrf.mxu1 }
  0xf3   : > { %v601_v49 = vadd.f32 %v600_v47, %v2643_v25  ;;  %v642_v51 = vadd.f32 %v641_v48, %v2643_v25 }
  0xf4   : > { %v975_v17 = vmax.f32 %v680_v9, 0.0  ;;  %v976_v52 = vmax.f32 %v721_v44, 0.0  ;;  %2170 = vmatmul.msk.f32.gmra.mxu0 %vm358_vm1, %v2383_v18  ;;  %v2711_v47 = vpop.permute.xlu2 %315 }
  0xf5   : > { %v986_v53 = vmax.f32 %v601_v49, 0.0  ;;  %v987_v22 = vmax.f32 %v642_v51, 0.0 }
  0xf6   : > { %v1073_v26 = vadd.f32 %v976_v52, %v975_v17 }
  0xf7   : > { %v1066_v27 = vadd.f32 %v987_v22, %v986_v53 }
  0xf8   : > { %v2703_v28 = vadd.f32 %v1073_v26, %v1065_v39 }
  0xf9   : > { %v682_v16 = vpop.f32.mrf.mxu2  ;;  %v723_v29 = vpop.f32.mrf.mxu3 }
  0xfa   : > { %v683_v30 = vadd.f32 %v682_v16, %v2643_v25  ;;  %v724_v32 = vadd.f32 %v723_v29, %v2643_v25  ;;  %v603_v34 = vpop.f32.mrf.mxu0  ;;  %v644_v35 = vpop.f32.mrf.mxu1 }
  0xfb   : > { %v604_v36 = vadd.f32 %v603_v34, %v2701_v23  ;;  %v645_v18 = vadd.f32 %v644_v35, %v2701_v23 }
  0xfc   : > { %v988_v38 = vmax.f32 %v683_v30, 0.0  ;;  %v989_v42 = vmax.f32 %v724_v32, 0.0  ;;  %2171 = vmatmul.msk.f32.gmra.mxu0 %vm358_vm1, %v2405_v24 }
  0xfd   : > { %v999_v43 = vmax.f32 %v604_v36, 0.0  ;;  %v1000_v39 = vmax.f32 %v645_v18, 0.0 }
  0xfe   : > { %v1074_v9 = vadd.f32 %v989_v42, %v988_v38 }
  0xff   : > { %v1067_v44 = vadd.f32 %v1000_v39, %v999_v43 }
 0x100   : > { %v2713_v48 = vadd.f32 %v1074_v9, %v1066_v27 }
 0x101   : > { %v685_v49 = vpop.f32.mrf.mxu2  ;;  %v726_v51 = vpop.f32.mrf.mxu3 }
 0x102   : > { %v686_v17 = vadd.f32 %v685_v49, %v2701_v23  ;;  %v727_v52 = vadd.f32 %v726_v51, %v2701_v23  ;;  %v606_v53 = vpop.f32.mrf.mxu0  ;;  %v647_v22 = vpop.f32.mrf.mxu1 }
 0x103   : > { %v607_v26 = vadd.f32 %v606_v53, %v2711_v47  ;;  %v648_v24 = vadd.f32 %v647_v22, %v2711_v47 }
 0x104   : > { %v1001_v16 = vmax.f32 %v686_v17, 0.0  ;;  %v1002_v29 = vmax.f32 %v727_v52, 0.0  ;;  %2172 = vmatmul.msk.f32.gmra.mxu0 %vm358_vm1, %v2428_v33 }
 0x105   : > { %v1012_v30 = vmax.f32 %v607_v26, 0.0  ;;  %v1013_v27 = vmax.f32 %v648_v24, 0.0 }
 0x106   : > { %v1075_v32 = vadd.f32 %v1002_v29, %v1001_v16 }
 0x107   : > { %v1068_v34 = vadd.f32 %v1013_v27, %v1012_v30 }
 0x108   : > { %v2721_v35 = vadd.f32 %v1075_v32, %v1067_v44 }
 0x109   : > { %v688_v36 = vpop.f32.mrf.mxu2  ;;  %v729_v18 = vpop.f32.mrf.mxu3 }
 0x10a   : > { %3439 = vst [vmem:[#allocation5_spill] sm:$0xff] %v2721_v35  ;;  %v689_v38 = vadd.f32 %v688_v36, %v2711_v47  ;;  %v730_v42 = vadd.f32 %v729_v18, %v2711_v47  ;;  %v609_v43 = vpop.f32.mrf.mxu0  ;;  %v650_v39 = vpop.f32.mrf.mxu1 }
 0x10b   : > { %v610_v9 = vadd.f32 %v609_v43, %v2637_v19  ;;  %v651_v49 = vadd.f32 %v650_v39, %v2637_v19 }
 0x10c   : > { %v1014_v51 = vmax.f32 %v689_v38, 0.0  ;;  %v1015_v33 = vmax.f32 %v730_v42, 0.0  ;;  %2173 = vmatmul.msk.f32.gmra.mxu0 %vm358_vm1, %v2445_v40 }
 0x10d   : > { %v1025_v17 = vmax.f32 %v610_v9, 0.0  ;;  %v1026_v44 = vmax.f32 %v651_v49, 0.0 }
 0x10e   : > { %v1076_v52 = vadd.f32 %v1015_v33, %v1014_v51 }
 0x10f   : > { %v1069_v53 = vadd.f32 %v1026_v44, %v1025_v17 }
 0x110   : > { %v2729_v22 = vadd.f32 %v1076_v52, %v1068_v34 }
 0x111   : > { %v691_v26 = vpop.f32.mrf.mxu2  ;;  %v732_v24 = vpop.f32.mrf.mxu3 }
 0x112   : > { %3440 = vst [vmem:[#allocation6_spill] sm:$0xff] %v2729_v22  ;;  %v692_v16 = vadd.f32 %v691_v26, %v2637_v19  ;;  %v733_v29 = vadd.f32 %v732_v24, %v2637_v19  ;;  %v612_v30 = vpop.f32.mrf.mxu0  ;;  %v653_v27 = vpop.f32.mrf.mxu1 }
 0x113   : > { %v613_v32 = vadd.f32 %v612_v30, %v2657_v37  ;;  %v654_v36 = vadd.f32 %v653_v27, %v2657_v37 }
 0x114   : > { %v1027_v18 = vmax.f32 %v692_v16, 0.0  ;;  %v1028_v40 = vmax.f32 %v733_v29, 0.0  ;;  %2174 = vmatmul.msk.f32.gmra.mxu0 %vm358_vm1, %v2460_v46  ;;  %vm1963_vm1 = vcmask 1043456  }
 0x115   : > { %v1038_v38 = vmax.f32 %v613_v32, 0.0  ;;  %v1039_v34 = vmax.f32 %v654_v36, 0.0 }
 0x116   : > { %v1077_v42 = vadd.f32 %v1028_v40, %v1027_v18 }
 0x117   : > { %v1070_v43 = vadd.f32 %v1039_v34, %v1038_v38 }
 0x118   : > { %v1109_v39 = vadd.f32 %v1077_v42, %v1069_v53 }
 0x119   : > { %v694_v9 = vpop.f32.mrf.mxu2  ;;  %v735_v49 = vpop.f32.mrf.mxu3 }
 0x11a   : > { %v695_v51 = vadd.f32 %v694_v9, %v2657_v37  ;;  %v736_v33 = vadd.f32 %v735_v49, %v2657_v37  ;;  %v755_v17 = vpop.f32.mrf.mxu0  ;;  %v2740_v44 = vadd.f32 %v1109_v39, %v2669_v45  ;;  %v796_v18 = vpop.f32.mrf.mxu1  ;;  %v428_v49 = vadd.f32 %v2538_v54, %v2595_v4 }
 0x11c   : > { %3441 = vst [vmem:[#allocation7_spill] sm:$0xff] %v2740_v44  ;;  %v1040_v52 = vmax.f32 %v695_v51, 0.0  ;;  %v1041_v26 = vmax.f32 %v736_v33, 0.0  ;;  %v469_v51 = vadd.f32 %v2541_v55, %v2595_v4  ;;  %v513_v55 = vadd.f32 %v2567_v60, %v2617_v10 }
 0x11e   : > { %v1078_v24 = vadd.f32 %v1041_v26, %v1040_v52  ;;  %v756_v52 = vadd.f32 %v755_v17, %v2595_v4  ;;  %v797_v26 = vadd.f32 %v796_v18, %v2595_v4  ;;  %v944_v37 = vmax.f32 %v469_v51, 0.0 }
 0x11f   : > { %v554_v17 = vadd.f32 %v2569_v61, %v2617_v10 }
 0x120   : > { %v1110_v16 = vadd.f32 %v1078_v24, %v1070_v43  ;;  %v551_v43 = vadd.f32 %v2553_v57, %v2595_v4  ;;  %v951_v22 = vmax.f32 %v756_v52, 0.0  ;;  %v952_v54 = vmax.f32 %v797_v26, 0.0 }
 0x121   : > { %v837_v32 = vpop.f32.mrf.mxu2  ;;  %v878_v36 = vpop.f32.mrf.mxu3  ;;  %v958_v26 = vmax.f32 %v513_v55, 0.0  ;;  %v557_v55 = vadd.f32 %v2585_v1, %v2619_v11 }
 0x122   : > { %v758_v46 = vpop.f32.mrf.mxu0  ;;  %v2743_v29 = vadd.f32 %v1110_v16, %v2677_v31  ;;  %v799_v42 = vpop.f32.mrf.mxu1  ;;  %v510_v31 = vadd.f32 %v2551_v56, %v2595_v4  ;;  %v838_v39 = vadd.f32 %v837_v32, %v2595_v4  ;;  %v879_v9 = vadd.f32 %v878_v36, %v2595_v4 }
 0x123   : > { %v946_v57 = vmax.f32 %v551_v43, 0.0  ;;  %v943_v36 = vmax.f32 %v428_v49, 0.0  ;;  %v1079_v51 = vadd.f32 %v952_v54, %v951_v22  ;;  %v759_v52 = vadd.f32 %v758_v46, %v2617_v10 }
 0x124   : > { %3442 = vst [vmem:[#allocation8_spill] sm:$0xff] %v2743_v29  ;;  %v945_v16 = vmax.f32 %v510_v31, 0.0  ;;  %v953_v29 = vmax.f32 %v838_v39, 0.0  ;;  %v954_v32 = vmax.f32 %v879_v9, 0.0  ;;  %v431_v39 = vadd.f32 %v2555_v58, %v2617_v10 }
 0x125   : > { %v1047_v43 = vadd.f32 %v944_v37, %v943_v36  ;;  %v472_v9 = vadd.f32 %v2557_v59, %v2617_v10  ;;  %v800_v60 = vadd.f32 %v799_v42, %v2617_v10  ;;  %v964_v59 = vmax.f32 %v759_v52, 0.0 }
 0x126   : > { %v956_v36 = vmax.f32 %v431_v39, 0.0 }
 0x127   : > { %v957_v19 = vmax.f32 %v472_v9, 0.0  ;;  %v965_v35 = vmax.f32 %v800_v60, 0.0 }
 0x129   : > { %v840_v45 = vpop.f32.mrf.mxu2  ;;  %v881_v38 = vpop.f32.mrf.mxu3  ;;  %v1048_v39 = vadd.f32 %v957_v19, %v956_v36  ;;  %v519_v36 = vadd.f32 %v2601_v5, %v2643_v25 }
 0x12a   : > { %v2745_v30 = vpop.f32.mrf.mxu0  ;;  %v802_v44 = vpop.f32.mrf.mxu1  ;;  %v841_v18 = vadd.f32 %v840_v45, %v2617_v10  ;;  %v882_v31 = vadd.f32 %v881_v38, %v2617_v10  ;;  %v959_v45 = vmax.f32 %v554_v17, 0.0 }
 0x12b   : > { %v1197_v17 = vpop.permute.xlu2 %1196  ;;  %v803_v9 = vadd.f32 %v802_v44, %v2619_v11 }
 0x12c   : > { %v967_v38 = vmax.f32 %v882_v31, 0.0  ;;  %v1056_v42 = vadd.f32 %v959_v45, %v958_v26 }
 0x12d   : > { %v978_v44 = vmax.f32 %v803_v9, 0.0 }
 0x12e   : > { %v1096_v52 = vadd.f32 %v1056_v42, %v1048_v39 }
 0x131   : > { %v843_v56 = vpop.f32.mrf.mxu2  ;;  %v884_v24 = vpop.f32.mrf.mxu3 }
 0x132   : > { %v2747_v53 = vpop.f32.mrf.mxu0  ;;  %v805_v22 = vpop.f32.mrf.mxu1  ;;  %v885_v31 = vadd.f32 %v884_v24, %v2619_v11 }
 0x133   : > { %v806_v5 = vadd.f32 %v805_v22, %v2643_v25  ;;  %v563_v22 = vadd.f32 %v2623_v13, %v2701_v23  ;;  %v1207_v13 = vpop.permute.xlu1 %1206 }
 0x139   : > { %v846_v37 = vpop.f32.mrf.mxu2 }
 0x13a   : > { %v2749_v27 = vpop.f32.mrf.mxu0  ;;  %v808_v42 = vpop.f32.mrf.mxu1 }
 0x142   : > { %v2751_v40 = vpop.f32.mrf.mxu0 }
 0x14a   : > { %v2753_v34 = vpop.f32.mrf.mxu0 }
 0x14b   : > { %3443 = vst [vmem:[#allocation9_spill] sm:$0xff] %v2753_v34  ;;  %v1055_v34 = vadd.f32 %v946_v57, %v945_v16  ;;  %v966_v16 = vmax.f32 %v841_v18, 0.0  ;;  %v887_v57 = vpop.f32.mrf.mxu3  ;;  %v844_v18 = vadd.f32 %v843_v56, %v2619_v11 }
 0x14d   : > { %v979_v24 = vmax.f32 %v844_v18, 0.0 }
 0x152   : > { %v2765_v33 = vpop.f32.mrf.mxu0 }
 0x153   : > { %3444 = vst [vmem:[#allocation10_spill] sm:$0xff] %v2765_v33  ;;  %v1087_v33 = vadd.f32 %v954_v32, %v953_v29  ;;  %v1095_v29 = vadd.f32 %v1055_v34, %v1047_v43  ;;  %v516_v34 = vadd.f32 %v2583_v0, %v2619_v11 }
 0x155   : > { %v1111_v58 = vadd.f32 %v1087_v33, %v1079_v51  ;;  %v1119_v46 = vadd.f32 %v2685_v50, %v1095_v29  ;;  %v1088_v33 = vadd.f32 %v967_v38, %v966_v16  ;;  %v475_v50 = vadd.f32 %v2573_v63, %v2619_v11  ;;  %v849_v16 = vpop.f32.mrf.mxu2 }
 0x156   : > { %v971_v56 = vmax.f32 %v516_v34, 0.0  ;;  %v980_v29 = vmax.f32 %v885_v31, 0.0 }
 0x157   : > { %v970_v63 = vmax.f32 %v475_v50, 0.0 }
 0x15a   : > { %v919_v49 = vpop.f32.mrf.mxu0 }
 0x15b   : > { %v920_v61 = vadd.f32 %v919_v49, %v2595_v4  ;;  %v434_v4 = vadd.f32 %v2571_v62, %v2619_v11  ;;  %v762_v62 = vadd.f32 %v2745_v30, %v2619_v11  ;;  %v1080_v49 = vadd.f32 %v965_v35, %v964_v59  ;;  %v890_v35 = vpop.f32.mrf.mxu3 }
 0x15c   : > { %v437_v30 = vadd.f32 %v2587_v2, %v2643_v25  ;;  %v560_v59 = vadd.f32 %v2603_v6, %v2643_v25  ;;  %v847_v2 = vadd.f32 %v846_v37, %v2643_v25  ;;  %v984_v37 = vmax.f32 %v519_v36, 0.0 }
 0x15d   : > { %v955_v32 = vmax.f32 %v920_v61, 0.0  ;;  %v969_v60 = vmax.f32 %v434_v4, 0.0  ;;  %v972_v61 = vmax.f32 %v557_v55, 0.0  ;;  %v1112_v26 = vadd.f32 %v1088_v33, %v1080_v49 }
 0x15e   : > { %v977_v45 = vmax.f32 %v762_v62, 0.0  ;;  %v982_v55 = vmax.f32 %v437_v30, 0.0  ;;  %v985_v39 = vmax.f32 %v560_v59, 0.0  ;;  %v991_v49 = vmax.f32 %v806_v5, 0.0 }
 0x15f   : > { %v1127_v54 = vadd.f32 %v1111_v58, %v955_v32  ;;  %v1057_v32 = vadd.f32 %v972_v61, %v971_v56  ;;  %v478_v58 = vadd.f32 %v2589_v3, %v2643_v25  ;;  %v1049_v34 = vadd.f32 %v970_v63, %v969_v60 }
 0x160   : > { %v765_v3 = vadd.f32 %v2747_v53, %v2643_v25  ;;  %v850_v56 = vadd.f32 %v849_v16, %v2701_v23  ;;  %v891_v61 = vadd.f32 %v890_v35, %v2701_v23  ;;  %v809_v63 = vadd.f32 %v808_v42, %v2701_v23 }
 0x161   : > { %v1135_v43 = vadd.f32 %v1127_v54, %v1119_v46  ;;  %v1089_v54 = vadd.f32 %v980_v29, %v979_v24  ;;  %v888_v46 = vadd.f32 %v887_v57, %v2643_v25  ;;  %v1097_v31 = vadd.f32 %v1057_v32, %v1049_v34  ;;  %v852_v24 = vpop.f32.mrf.mxu2  ;;  %v811_v32 = vpop.f32.mrf.mxu1 }
 0x162   : > { %v922_v0 = vpop.f32.mrf.mxu0  ;;  %v992_v57 = vmax.f32 %v847_v2, 0.0  ;;  %v1004_v2 = vmax.f32 %v809_v63, 0.0  ;;  %v566_v34 = vadd.f32 %v2641_v21, %v2711_v47  ;;  %v443_v5 = vadd.f32 %v2625_v14, %v2711_v47 }
 0x163   : > { %v1234_v51 = vsub.f32 %v1135_v43, %v1197_v17  ;;  %v923_v1 = vadd.f32 %v922_v0, %v2617_v10  ;;  %v1120_v10 = vadd.f32 %v2693_v41, %v1096_v52  ;;  %v1081_v41 = vadd.f32 %v978_v44, %v977_v45  ;;  %v1202_v17 = vpop.permute.xlu0 %1201  ;;  %v893_v29 = vpop.f32.mrf.mxu3 }
 0x164   : > { %v983_v43 = vmax.f32 %v478_v58, 0.0  ;;  %v993_v50 = vmax.f32 %v888_v46, 0.0  ;;  %v990_v0 = vmax.f32 %v765_v3, 0.0  ;;  %v1058_v52 = vadd.f32 %v985_v39, %v984_v37 }
 0x165   : > { %v968_v19 = vmax.f32 %v923_v1, 0.0  ;;  %1242 = vadd.xlane.f32.xlu1 %v1234_v51  ;;  %v1113_v9 = vadd.f32 %v1089_v54, %v1081_v41  ;;  %v1121_v1 = vadd.f32 %v2703_v28, %v1097_v31  ;;  %v481_v28 = vadd.f32 %v2607_v8, %v2701_v23 }
 0x166   : > { %v1050_v53 = vadd.f32 %v983_v43, %v982_v55  ;;  %v1090_v60 = vadd.f32 %v993_v50, %v992_v57  ;;  %v1082_v45 = vadd.f32 %v991_v49, %v990_v0  ;;  %v1005_v58 = vmax.f32 %v850_v56, 0.0 }
 0x167   : > { %v1128_v38 = vadd.f32 %v1112_v26, %v968_v19  ;;  %v440_v26 = vadd.f32 %v2605_v7, %v2701_v23  ;;  %v1006_v7 = vmax.f32 %v891_v61, 0.0  ;;  %v996_v54 = vmax.f32 %v481_v28, 0.0  ;;  %v3446_v61 = vld [vmem:[#allocation3_spill] sm:$0xff]  ;;  %v3447_v28 = vld [vmem:[#allocation9_spill] sm:$0xff] }
 0x168   : > { %v1098_v35 = vadd.f32 %v1058_v52, %v1050_v53  ;;  %v1114_v59 = vadd.f32 %v1090_v60, %v1082_v45  ;;  %v853_v41 = vadd.f32 %v852_v24, %v2711_v47  ;;  %v812_v21 = vadd.f32 %v811_v32, %v2711_v47 }
 0x169   : > { %v1136_v4 = vadd.f32 %v1128_v38, %v1120_v10  ;;  %v998_v10 = vmax.f32 %v563_v22, 0.0  ;;  %v995_v8 = vmax.f32 %v440_v26, 0.0  ;;  %v1091_v55 = vadd.f32 %v1006_v7, %v1005_v58  ;;  %v814_v53 = vpop.f32.mrf.mxu1  ;;  %v3445_v22 = vld [vmem:[#allocation5_spill] sm:$0xff] }
 0x16a   : > { %v925_v33 = vpop.f32.mrf.mxu0  ;;  %v1122_v42 = vadd.f32 %v2713_v48, %v1098_v35  ;;  %v484_v48 = vadd.f32 %v2627_v15, %v2711_v47  ;;  %v1011_v50 = vmax.f32 %v566_v34, 0.0  ;;  %v1018_v14 = vmax.f32 %v853_v41, 0.0  ;;  %v1222_v41 = vpop.permute.xlu1 %1221 }
 0x16b   : > { %v926_v18 = vadd.f32 %v925_v33, %v2619_v11  ;;  %v1235_v6 = vsub.f32 %v1136_v4, %v1202_v17  ;;  %v522_v11 = vadd.f32 %v2621_v12, %v2701_v23  ;;  %v768_v12 = vadd.f32 %v2749_v27, %v2701_v23 }
 0x16c   : > { %v894_v17 = vadd.f32 %v893_v29, %v2711_v47  ;;  %v1051_v3 = vadd.f32 %v996_v54, %v995_v8  ;;  %v815_v63 = vadd.f32 %v814_v53, %v3446_v61 }
 0x16d   : > { %v981_v62 = vmax.f32 %v926_v18, 0.0  ;;  %1244 = vadd.xlane.f32.xlu2 %v1235_v6  ;;  %v997_v38 = vmax.f32 %v522_v11, 0.0  ;;  %v1003_v27 = vmax.f32 %v768_v12, 0.0  ;;  %v1212_v6 = vpop.permute.xlu2 %1211  ;;  %v774_v12 = vadd.f32 %v3447_v28, %v3446_v61  ;;  %v1366_v28 = vld [vmem:[%s3430_s3 + $0x320] sm:$0xff] }
 0x16e   : > { %v1019_v0 = vmax.f32 %v894_v17, 0.0 }
 0x16f   : > { %v1129_v51 = vadd.f32 %v1113_v9, %v981_v62  ;;  %v1059_v4 = vadd.f32 %v998_v10, %v997_v38  ;;  %v1083_v18 = vadd.f32 %v1004_v2, %v1003_v27  ;;  %v855_v62 = vpop.f32.mrf.mxu2  ;;  %v896_v9 = vpop.f32.mrf.mxu3  ;;  %v1029_v7 = vmax.f32 %v774_v12, 0.0  ;;  %v3448_v27 = vld [vmem:[#allocation6_spill] sm:$0xff] }
 0x170   : > { %v1092_v56 = vadd.f32 %v1019_v0, %v1018_v14  ;;  %v856_v24 = vadd.f32 %v855_v62, %v3446_v61  ;;  %v897_v29 = vadd.f32 %v896_v9, %v3446_v61  ;;  %v1346_v12 = vld [vmem:[%s3430_s3 + $0x280] sm:$0xff] }
 0x171   : > { %v1137_v19 = vadd.f32 %v1129_v51, %v1121_v1  ;;  %v1099_v39 = vadd.f32 %v1059_v4, %v1051_v3  ;;  %v1115_v15 = vadd.f32 %v1091_v55, %v1083_v18  ;;  %v1008_v51 = vmax.f32 %v443_v5, 0.0  ;;  %v3449_v4 = vld [vmem:[#allocation4_spill] sm:$0xff] }
 0x172   : > { %v928_v30 = vpop.f32.mrf.mxu0  ;;  %v1009_v1 = vmax.f32 %v484_v48, 0.0  ;;  %v1031_v38 = vmax.f32 %v856_v24, 0.0  ;;  %v1032_v10 = vmax.f32 %v897_v29, 0.0  ;;  %v1388_v24 = vld [vmem:[%s3430_s3 + $0x3d0] sm:$0xff]  ;;  %v1386_v29 = vld [vmem:[%s3430_s3 + $0x3c0] sm:$0xff] }
 0x173   : > { %v1236_v44 = vsub.f32 %v1137_v19, %v1207_v13  ;;  %v929_v16 = vadd.f32 %v928_v30, %v2643_v25  ;;  %v525_v25 = vadd.f32 %v2639_v20, %v2711_v47  ;;  %v771_v20 = vadd.f32 %v2751_v40, %v2711_v47  ;;  %v1217_v13 = vpop.permute.xlu0 %1216 }
 0x174   : > { %v1017_v40 = vmax.f32 %v812_v21, 0.0  ;;  %v1123_v60 = vadd.f32 %v3445_v22, %v1099_v39  ;;  %v1052_v26 = vadd.f32 %v1009_v1, %v1008_v51 }
 0x175   : > { %v994_v36 = vmax.f32 %v929_v16, 0.0  ;;  %1246 = vadd.xlane.f32.xlu0 %v1236_v44  ;;  %v1010_v57 = vmax.f32 %v525_v25, 0.0  ;;  %v1016_v52 = vmax.f32 %v771_v20, 0.0  ;;  %v1227_v9 = vpop.permute.xlu2 %1226 }
 0x177   : > { %v1130_v46 = vadd.f32 %v1114_v59, %v994_v36  ;;  %v1084_v45 = vadd.f32 %v1017_v40, %v1016_v52  ;;  %v1030_v36 = vmax.f32 %v815_v63, 0.0  ;;  %v858_v59 = vpop.f32.mrf.mxu2  ;;  %v899_v8 = vpop.f32.mrf.mxu3  ;;  %v3452_v52 = vld [vmem:[#allocation8_spill] sm:$0xff]  ;;  %v1347_v63 = vld [vmem:[%s3430_s3 + $0x288] sm:$0xff] }
 0x178   : > { %v859_v25 = vadd.f32 %v858_v59, %v3449_v4  ;;  %v1378_v59 = vld [vmem:[%s3430_s3 + $0x380] sm:$0xff] }
 0x179   : > { %v1138_v33 = vadd.f32 %v1130_v46, %v1122_v42  ;;  %v1116_v58 = vadd.f32 %v1092_v56, %v1084_v45  ;;  %v817_v46 = vpop.f32.mrf.mxu1  ;;  %v1093_v42 = vadd.f32 %v1032_v10, %v1031_v38  ;;  %v1085_v55 = vadd.f32 %v1030_v36, %v1029_v7  ;;  %v1406_v56 = vld [vmem:[%s3430_s3 + $0x460] sm:$0xff]  ;;  %v1328_v45 = vld [vmem:[%s3430_s3 + $0x1f0] sm:$0xff]  ;;  %v1307_v38 = vld [vmem:[%s3430_s3 + $0x148] sm:$0xff] }
 0x17a   : > { %v931_v31 = vpop.f32.mrf.mxu0  ;;  %v818_v5 = vadd.f32 %v817_v46, %v3449_v4  ;;  %1522 = vmatpush.msrb.mxu1 %v1406_v56  ;;  %v1308_v10 = vld [vmem:[%s3430_s3 + $0x150] sm:$0xff]  ;;  %v1287_v7 = vld [vmem:[%s3430_s3 + $0xa8] sm:$0xff]  ;;  %v1409_v46 = vld [vmem:[%s3430_s3 + $0x478] sm:$0xff] }
 0x17b   : > { %v932_v43 = vadd.f32 %v931_v31, %v2701_v23  ;;  %v1237_v37 = vsub.f32 %v1138_v33, %v1212_v6  ;;  %v1060_v23 = vadd.f32 %v1011_v50, %v1010_v57  ;;  %v3450_v33 = vld [vmem:[#allocation10_spill] sm:$0xff]  ;;  %v1044_v6 = vmax.f32 %v859_v25, 0.0  ;;  %v3451_v50 = vld [vmem:[#allocation7_spill] sm:$0xff]  ;;  %v1288_v36 = vld [vmem:[%s3430_s3 + $0xb0] sm:$0xff] }
 0x17c   : > { %v777_v3 = vadd.f32 %v3450_v33, %v3449_v4  ;;  %v1117_v21 = vadd.f32 %v1093_v42, %v1085_v55  ;;  %1523 = vmatpush.msrb.mxu1 %v1386_v29  ;;  %v1410_v42 = vld [vmem:[%s3430_s3 + $0x480] sm:$0xff]  ;;  %v1391_v55 = vld [vmem:[%s3430_s3 + $0x3e8] sm:$0xff] }
 0x17d   : > { %v1007_v49 = vmax.f32 %v932_v43, 0.0  ;;  %1248 = vadd.xlane.f32.xlu2 %v1237_v37  ;;  %v1100_v35 = vadd.f32 %v1060_v23, %v1052_v26  ;;  %v1043_v37 = vmax.f32 %v818_v5, 0.0  ;;  %v1408_v23 = vld [vmem:[%s3430_s3 + $0x470] sm:$0xff]  ;;  %v1338_v25 = vld [vmem:[%s3430_s3 + $0x240] sm:$0xff] }
 0x17e   : > { %v1042_v43 = vmax.f32 %v777_v3, 0.0  ;;  %1562 = vmatpush.msrb.mxu3 %v1408_v23  ;;  %v1368_v26 = vld [vmem:[%s3430_s3 + $0x330] sm:$0xff]  ;;  %1524 = vmatpush.msrb.mxu1 %v1366_v28  ;;  %v1370_v33 = vld [vmem:[%s3430_s3 + $0x340] sm:$0xff]  ;;  %v1371_v3 = vld [vmem:[%s3430_s3 + $0x348] sm:$0xff] }
 0x17f   : > { %v1131_v11 = vadd.f32 %v1115_v15, %v1007_v49  ;;  %v1124_v2 = vadd.f32 %v3448_v27, %v1100_v35  ;;  %v1306_v35 = vld [vmem:[%s3430_s3 + $0x140] sm:$0xff]  ;;  %v1268_v27 = vld [vmem:[%s3430_s3 + $0x10] sm:$0xff] }
 0x180   : > { %v1086_v0 = vadd.f32 %v1043_v37, %v1042_v43  ;;  %1563 = vmatpush.msrb.mxu3 %v1388_v24  ;;  %1525 = vmatpush.msrb.mxu1 %v1346_v12  ;;  %v1298_v5 = vld [vmem:[%s3430_s3 + $0x100] sm:$0xff]  ;;  %v1331_v43 = vld [vmem:[%s3430_s3 + $0x208] sm:$0xff] }
 0x181   : > { %v1139_v19 = vadd.f32 %v1131_v11, %v1123_v60  ;;  %v1232_v11 = vpop.permute.xlu0 %1231  ;;  %v1407_v60 = vld [vmem:[%s3430_s3 + $0x468] sm:$0xff]  ;;  %v1422_v37 = vld [vmem:[%s3430_s3 + $0x4e0] sm:$0xff] }
 0x182   : > { %v934_v30 = vpop.f32.mrf.mxu0  ;;  %1542 = vmatpush.msrb.mxu2 %v1407_v60  ;;  %1564 = vmatpush.msrb.mxu3 %v1368_v26  ;;  %v1282_v60 = vld [vmem:[%s3430_s3 + $0x80] sm:$0xff] }
 0x183   : > { %v935_v44 = vadd.f32 %v934_v30, %v2711_v47  ;;  %v1238_v16 = vsub.f32 %v1139_v19, %v1217_v13  ;;  %v900_v47 = vadd.f32 %v899_v8, %v3449_v4  ;;  %v1367_v19 = vld [vmem:[%s3430_s3 + $0x328] sm:$0xff]  ;;  %v1348_v13 = vld [vmem:[%s3430_s3 + $0x290] sm:$0xff]  ;;  %v1266_v8 = vld [vmem:[%s3430_s3] sm:$0xff] }
 0x184   : > { %v1327_v30 = vld [vmem:[%s3430_s3 + $0x1e8] sm:$0xff]  ;;  %1565 = vmatpush.msrb.mxu3 %v1348_v13 }
 0x185   : > { %v1020_v32 = vmax.f32 %v935_v44, 0.0  ;;  %1250 = vadd.xlane.f32.xlu1 %v1238_v16  ;;  %v1045_v31 = vmax.f32 %v900_v47, 0.0  ;;  %v1326_v44 = vld [vmem:[%s3430_s3 + $0x1e0] sm:$0xff]  ;;  %v1389_v47 = vld [vmem:[%s3430_s3 + $0x3d8] sm:$0xff] }
 0x186   : > { %v1418_v16 = vld [vmem:[%s3430_s3 + $0x4c0] sm:$0xff]  ;;  %1566 = vmatpush.msrb.mxu3 %v1328_v45  ;;  %1526 = vmatpush.msrb.mxu1 %v1326_v44 }
 0x187   : > { %v1132_v54 = vadd.f32 %v1116_v58, %v1020_v32  ;;  %v1094_v57 = vadd.f32 %v1045_v31, %v1044_v6  ;;  %1762 = vmatpush.msra.mxu0 %v1418_v16  ;;  %v1398_v32 = vld [vmem:[%s3430_s3 + $0x420] sm:$0xff]  ;;  %v1351_v6 = vld [vmem:[%s3430_s3 + $0x2a8] sm:$0xff] }
 0x188   : > { %1567 = vmatpush.msrb.mxu3 %v1308_v10  ;;  %1527 = vmatpush.msrb.mxu1 %v1306_v35  ;;  %v1286_v58 = vld [vmem:[%s3430_s3 + $0xa0] sm:$0xff] }
 0x189   : > { %v1140_v34 = vadd.f32 %v1132_v54, %v1124_v2  ;;  %v1118_v1 = vadd.f32 %v1094_v57, %v1086_v0  ;;  %1763 = vmatpush.msra.mxu0 %v1398_v32  ;;  %v1267_v54 = vld [vmem:[%s3430_s3 + $0x8] sm:$0xff]  ;;  %v1358_v2 = vld [vmem:[%s3430_s3 + $0x2e0] sm:$0xff] }
 0x18a   : > { %v937_v17 = vpop.f32.mrf.mxu0  ;;  %1568 = vmatpush.msrb.mxu3 %v1288_v36  ;;  %1528 = vmatpush.msrb.mxu1 %v1286_v58  ;;  %v1278_v31 = vld [vmem:[%s3430_s3 + $0x60] sm:$0xff]  ;;  %v1291_v0 = vld [vmem:[%s3430_s3 + $0xc8] sm:$0xff] }
 0x18b   : > { %v938_v48 = vadd.f32 %v937_v17, %v3446_v61  ;;  %v1239_v18 = vsub.f32 %v1140_v34, %v1222_v41  ;;  %v1387_v61 = vld [vmem:[%s3430_s3 + $0x3c8] sm:$0xff]  ;;  %1764 = vmatpush.msra.mxu0 %v1378_v59  ;;  %v1390_v34 = vld [vmem:[%s3430_s3 + $0x3e0] sm:$0xff]  ;;  %v1369_v17 = vld [vmem:[%s3430_s3 + $0x338] sm:$0xff] }
 0x18c   : > { %1543 = vmatpush.msrb.mxu2 %v1387_v61  ;;  %1569 = vmatpush.msrb.mxu3 %v1268_v27  ;;  %v1318_v41 = vld [vmem:[%s3430_s3 + $0x1a0] sm:$0xff]  ;;  %v1437_v61 = vlaneseq }
 0x18d   : > { %v1033_v20 = vmax.f32 %v938_v48, 0.0  ;;  %1252 = vadd.xlane.f32.xlu2 %v1239_v18  ;;  %1529 = vmatpush.msrb.mxu1 %v1266_v8  ;;  %v1349_v48 = vld [vmem:[%s3430_s3 + $0x298] sm:$0xff]  ;;  %v1350_v18 = vld [vmem:[%s3430_s3 + $0x2a0] sm:$0xff] }
 0x18e   : > { %1544 = vmatpush.msrb.mxu2 %v1367_v19  ;;  %1765 = vmatpush.msra.mxu0 %v1358_v2  ;;  %v1310_v57 = vld [vmem:[%s3430_s3 + $0x160] sm:$0xff]  ;;  %v1438_v29 = vand.u32 127, %v1437_v61  ;;  %vm1982_vm2 = vcmp.lt.s32.totalorder %v1437_v61, 512 }
 0x18f   : > { %v1133_v39 = vadd.f32 %v1117_v21, %v1033_v20  ;;  %1582 = vmatpush.msra.mxu1 %v1409_v46  ;;  %v1329_v20 = vld [vmem:[%s3430_s3 + $0x1f8] sm:$0xff]  ;;  %v1330_v21 = vld [vmem:[%s3430_s3 + $0x200] sm:$0xff] }
 0x190   : > { %1545 = vmatpush.msrb.mxu2 %v1347_v63  ;;  %1766 = vmatpush.msra.mxu0 %v1338_v25  ;;  %v1440_v19 = vadd.s32 4294967288, %v1438_v29  ;;  %v1444_v12 = vadd.s32 4294967280, %v1438_v29  ;;  %v1448_v45 = vadd.s32 4294967272, %v1438_v29  ;;  %v1452_v35 = vadd.s32 4294967264, %v1438_v29 }
 0x191   : > { %v1141_v62 = vadd.f32 %v1133_v39, %v3451_v50  ;;  %1583 = vmatpush.msra.mxu1 %v1389_v47  ;;  %v1309_v39 = vld [vmem:[%s3430_s3 + $0x158] sm:$0xff]  ;;  %v1311_v50 = vld [vmem:[%s3430_s3 + $0x168] sm:$0xff]  ;;  %v1456_v32 = vadd.s32 4294967256, %v1438_v29  ;;  %v1460_v36 = vadd.s32 4294967248, %v1438_v29 }
 0x192   : > { %v940_v14 = vpop.f32.mrf.mxu0  ;;  %1546 = vmatpush.msrb.mxu2 %v1327_v30  ;;  %1767 = vmatpush.msra.mxu0 %v1318_v41 }
 0x193   : > { %v941_v49 = vadd.f32 %v940_v14, %v3449_v4  ;;  %v1240_v15 = vsub.f32 %v1141_v62, %v1227_v9  ;;  %v1411_v4 = vld [vmem:[%s3430_s3 + $0x488] sm:$0xff]  ;;  %1584 = vmatpush.msra.mxu1 %v1369_v17  ;;  %v1402_v62 = vld [vmem:[%s3430_s3 + $0x440] sm:$0xff]  ;;  %v1289_v9 = vld [vmem:[%s3430_s3 + $0xb8] sm:$0xff] }
 0x194   : > { %1547 = vmatpush.msrb.mxu2 %v1307_v38  ;;  %1622 = vmatpush.msra.mxu3 %v1411_v4  ;;  %v1290_v14 = vld [vmem:[%s3430_s3 + $0xc0] sm:$0xff] }
 0x195   : > { %v1046_v51 = vmax.f32 %v941_v49, 0.0  ;;  %1254 = vadd.xlane.f32.xlu0 %v1240_v15  ;;  %1768 = vmatpush.msra.mxu0 %v1298_v5  ;;  %v1382_v49 = vld [vmem:[%s3430_s3 + $0x3a0] sm:$0xff]  ;;  %v1269_v15 = vld [vmem:[%s3430_s3 + $0x18] sm:$0xff]  ;;  %v1412_v5 = vld [vmem:[%s3430_s3 + $0x490] sm:$0xff] }
 0x196   : > { %1548 = vmatpush.msrb.mxu2 %v1287_v7  ;;  %1623 = vmatpush.msra.mxu3 %v1391_v55 }
 0x197   : > { %v1134_v53 = vadd.f32 %v1118_v1, %v1046_v51  ;;  %1585 = vmatpush.msra.mxu1 %v1349_v48  ;;  %1769 = vmatpush.msra.mxu0 %v1278_v31  ;;  %v1270_v51 = vld [vmem:[%s3430_s3 + $0x20] sm:$0xff]  ;;  %v1271_v1 = vld [vmem:[%s3430_s3 + $0x28] sm:$0xff]  ;;  %v1392_v31 = vld [vmem:[%s3430_s3 + $0x3f0] sm:$0xff] }
 0x198   : > { %1549 = vmatpush.msrb.mxu2 %v1267_v54  ;;  %1624 = vmatpush.msra.mxu3 %v1371_v3 }
 0x199   : > { %v1142_v40 = vadd.f32 %v1134_v53, %v3452_v52  ;;  %1586 = vmatpush.msra.mxu1 %v1329_v20  ;;  %1842 = vmatpush.msrb.mxu0 %v1422_v37  ;;  %v1362_v53 = vld [vmem:[%s3430_s3 + $0x300] sm:$0xff]  ;;  %v1393_v20 = vld [vmem:[%s3430_s3 + $0x3f8] sm:$0xff] }
 0x19a   : > { %1602 = vmatpush.msra.mxu2 %v1410_v42  ;;  %1625 = vmatpush.msra.mxu3 %v1351_v6  ;;  %v1464_v42 = vadd.s32 4294967240, %v1438_v29  ;;  %v1414_v6 = vld [vmem:[%s3430_s3 + $0x4a0] sm:$0xff]  ;;  %v1373_v37 = vld [vmem:[%s3430_s3 + $0x358] sm:$0xff] }
 0x19b   : > { %v1241_v22 = vsub.f32 %v1142_v40, %v1232_v11  ;;  %1587 = vmatpush.msra.mxu1 %v1309_v39  ;;  %1843 = vmatpush.msrb.mxu0 %v1402_v62  ;;  %v1342_v40 = vld [vmem:[%s3430_s3 + $0x260] sm:$0xff] }
 0x19c   : > { %1603 = vmatpush.msra.mxu2 %v1390_v34  ;;  %1626 = vmatpush.msra.mxu3 %v1331_v43  ;;  %v1322_v11 = vld [vmem:[%s3430_s3 + $0x1c0] sm:$0xff]  ;;  %v1372_v43 = vld [vmem:[%s3430_s3 + $0x350] sm:$0xff] }
 0x19d   : > { %1256 = vadd.xlane.f32.xlu1 %v1241_v22  ;;  %1588 = vmatpush.msra.mxu1 %v1289_v9  ;;  %v1302_v22 = vld [vmem:[%s3430_s3 + $0x120] sm:$0xff]  ;;  %v1332_v9 = vld [vmem:[%s3430_s3 + $0x210] sm:$0xff] }
 0x19e   : > { %1604 = vmatpush.msra.mxu2 %v1370_v33  ;;  %1627 = vmatpush.msra.mxu3 %v1311_v50  ;;  %v1374_v39 = vld [vmem:[%s3430_s3 + $0x360] sm:$0xff]  ;;  %v1353_v50 = vld [vmem:[%s3430_s3 + $0x2b8] sm:$0xff] }
 0x19f   : > { %1844 = vmatpush.msrb.mxu0 %v1382_v49  ;;  %1589 = vmatpush.msra.mxu1 %v1269_v15  ;;  %v1354_v62 = vld [vmem:[%s3430_s3 + $0x2c0] sm:$0xff]  ;;  %v1312_v49 = vld [vmem:[%s3430_s3 + $0x170] sm:$0xff]  ;;  %v1313_v15 = vld [vmem:[%s3430_s3 + $0x178] sm:$0xff] }
 0x1a0   : > { %1605 = vmatpush.msra.mxu2 %v1350_v18  ;;  %1628 = vmatpush.msra.mxu3 %v1291_v0  ;;  %v1413_v18 = vld [vmem:[%s3430_s3 + $0x498] sm:$0xff]  ;;  %v1334_v0 = vld [vmem:[%s3430_s3 + $0x220] sm:$0xff] }
 0x1a1   : > { %1845 = vmatpush.msrb.mxu0 %v1362_v53  ;;  %v1293_v53 = vld [vmem:[%s3430_s3 + $0xd8] sm:$0xff] }
 0x1a2   : > { %1606 = vmatpush.msra.mxu2 %v1330_v21  ;;  %1629 = vmatpush.msra.mxu3 %v1271_v1  ;;  %v1394_v21 = vld [vmem:[%s3430_s3 + $0x400] sm:$0xff]  ;;  %v1292_v1 = vld [vmem:[%s3430_s3 + $0xd0] sm:$0xff] }
 0x1a3   : > { %1846 = vmatpush.msrb.mxu0 %v1342_v40  ;;  %v1272_v40 = vld [vmem:[%s3430_s3 + $0x30] sm:$0xff] }
 0x1a4   : > { %1607 = vmatpush.msra.mxu2 %v1310_v57  ;;  %v1352_v57 = vld [vmem:[%s3430_s3 + $0x2b0] sm:$0xff] }
 0x1a5   : > { %1847 = vmatpush.msrb.mxu0 %v1322_v11  ;;  %v1273_v11 = vld [vmem:[%s3430_s3 + $0x38] sm:$0xff] }
 0x1a6   : > { %1608 = vmatpush.msra.mxu2 %v1290_v14  ;;  %v1333_v14 = vld [vmem:[%s3430_s3 + $0x218] sm:$0xff] }
 0x1a7   : > { %1848 = vmatpush.msrb.mxu0 %v1302_v22  ;;  %v1274_v22 = vld [vmem:[%s3430_s3 + $0x40] sm:$0xff] }
 0x1a8   : > { %1609 = vmatpush.msra.mxu2 %v1270_v51  ;;  %v1314_v51 = vld [vmem:[%s3430_s3 + $0x180] sm:$0xff] }
 0x1a9   : > { %1849 = vmatpush.msrb.mxu0 %v1282_v60  ;;  %v1415_v60 = vld [vmem:[%s3430_s3 + $0x4a8] sm:$0xff] }
 0x1d8   : > { %v1243_v23 = vpop.xlane.xlu1 %1242 }
 0x1d9   : > { %v1258_v30 = vmul.f32 0.0006377551, %v1243_v23  ;;  %v1416_v23 = vld [vmem:[%s3430_s3 + $0x4b0] sm:$0xff] }
 0x1db   : > { %v1439_v8 = vperm.slane %v1258_v30, %v1438_v29  ;;  %v1396_v29 = vld [vmem:[%s3430_s3 + $0x410] sm:$0xff]  ;;  %v1357_v30 = vld [vmem:[%s3430_s3 + $0x2d8] sm:$0xff] }
 0x1e0   : > { %v1245_v52 = vpop.xlane.xlu2 %1244 }
 0x1e1   : > { %v1259_v26 = vmul.f32 0.0006377551, %v1245_v52  ;;  %v1294_v52 = vld [vmem:[%s3430_s3 + $0xe0] sm:$0xff] }
 0x1e3   : > { %v1441_v10 = vperm.slane %v1259_v26, %v1440_v19  ;;  %v1397_v19 = vld [vmem:[%s3430_s3 + $0x418] sm:$0xff]  ;;  %v1375_v26 = vld [vmem:[%s3430_s3 + $0x368] sm:$0xff] }
 0x1e5   : > { %v1443_v2 = vsel %vm1442_vm3, %v1441_v10, %v1439_v8  ;;  %v1317_v10 = vld [vmem:[%s3430_s3 + $0x198] sm:$0xff] }
 0x1e6   : > { %v1277_v8 = vld [vmem:[%s3430_s3 + $0x58] sm:$0xff] }
 0x1e8   : > { %v1247_v24 = vpop.xlane.xlu0 %1246 }
 0x1e9   : > { %v1260_v63 = vmul.f32 0.0006377551, %v1247_v24  ;;  %v1395_v24 = vld [vmem:[%s3430_s3 + $0x408] sm:$0xff] }
 0x1eb   : > { %v1445_v7 = vperm.slane %v1260_v63, %v1444_v12  ;;  %v1377_v12 = vld [vmem:[%s3430_s3 + $0x378] sm:$0xff]  ;;  %v1355_v63 = vld [vmem:[%s3430_s3 + $0x2c8] sm:$0xff] }
 0x1ed   : > { %v1447_v4 = vsel %vm1446_vm4, %v1445_v7, %v1443_v2  ;;  %v1297_v7 = vld [vmem:[%s3430_s3 + $0xf8] sm:$0xff] }
 0x1ee   : > { %v1421_v2 = vld [vmem:[%s3430_s3 + $0x4d8] sm:$0xff] }
 0x1f0   : > { %v1249_v56 = vpop.xlane.xlu2 %1248 }
 0x1f1   : > { %v1261_v44 = vmul.f32 0.0006377551, %v1249_v56  ;;  %v1417_v56 = vld [vmem:[%s3430_s3 + $0x4b8] sm:$0xff] }
 0x1f3   : > { %v1449_v54 = vperm.slane %v1261_v44, %v1448_v45  ;;  %v1335_v45 = vld [vmem:[%s3430_s3 + $0x228] sm:$0xff]  ;;  %v1336_v44 = vld [vmem:[%s3430_s3 + $0x230] sm:$0xff] }
 0x1f5   : > { %v1451_v34 = vsel %vm1450_vm5, %v1449_v54, %v1447_v4  ;;  %v1419_v54 = vld [vmem:[%s3430_s3 + $0x4c8] sm:$0xff]  ;;  %v1401_v4 = vld [vmem:[%s3430_s3 + $0x438] sm:$0xff] }
 0x1f8   : > { %v1251_v28 = vpop.xlane.xlu1 %1250 }
 0x1f9   : > { %v1262_v38 = vmul.f32 0.0006377551, %v1251_v28  ;;  %v1376_v28 = vld [vmem:[%s3430_s3 + $0x370] sm:$0xff] }
 0x1fb   : > { %v1453_v27 = vperm.slane %v1262_v38, %v1452_v35  ;;  %v1315_v35 = vld [vmem:[%s3430_s3 + $0x188] sm:$0xff]  ;;  %v1316_v38 = vld [vmem:[%s3430_s3 + $0x190] sm:$0xff] }
 0x1fd   : > { %v1455_v41 = vsel %vm1454_vm6, %v1453_v27, %v1451_v34  ;;  %v1420_v27 = vld [vmem:[%s3430_s3 + $0x4d0] sm:$0xff]  ;;  %v1381_v34 = vld [vmem:[%s3430_s3 + $0x398] sm:$0xff] }
 0x200   : > { %v1253_v13 = vpop.xlane.xlu2 %1252 }
 0x201   : > { %v1263_v58 = vmul.f32 0.0006377551, %v1253_v13  ;;  %v1356_v13 = vld [vmem:[%s3430_s3 + $0x2d0] sm:$0xff] }
 0x203   : > { %v1457_v46 = vperm.slane %v1263_v58, %v1456_v32  ;;  %v1295_v32 = vld [vmem:[%s3430_s3 + $0xe8] sm:$0xff]  ;;  %v1296_v58 = vld [vmem:[%s3430_s3 + $0xf0] sm:$0xff] }
 0x205   : > { %v1459_v17 = vsel %vm1458_vm7, %v1457_v46, %v1455_v41  ;;  %v1399_v46 = vld [vmem:[%s3430_s3 + $0x428] sm:$0xff]  ;;  %v1360_v41 = vld [vmem:[%s3430_s3 + $0x2f0] sm:$0xff] }
 0x208   : > { %v1255_v16 = vpop.xlane.xlu0 %1254 }
 0x209   : > { %v1264_v59 = vmul.f32 0.0006377551, %v1255_v16  ;;  %v1337_v16 = vld [vmem:[%s3430_s3 + $0x238] sm:$0xff] }
 0x20b   : > { %v1461_v25 = vperm.slane %v1264_v59, %v1460_v36  ;;  %v1275_v36 = vld [vmem:[%s3430_s3 + $0x48] sm:$0xff]  ;;  %v1276_v59 = vld [vmem:[%s3430_s3 + $0x50] sm:$0xff] }
 0x20d   : > { %v1463_v3 = vsel %vm1462_vm8, %v1461_v25, %v1459_v17  ;;  %v1379_v25 = vld [vmem:[%s3430_s3 + $0x388] sm:$0xff]  ;;  %v1361_v17 = vld [vmem:[%s3430_s3 + $0x2f8] sm:$0xff] }
 0x210   : > { %v1257_v47 = vpop.xlane.xlu1 %1256 }
 0x211   : > { %v1265_v55 = vmul.f32 0.0006377551, %v1257_v47  ;;  %v1380_v47 = vld [vmem:[%s3430_s3 + $0x390] sm:$0xff] }
 0x213   : > { %v1465_v33 = vperm.slane %v1265_v55, %v1464_v42  ;;  %v1400_v42 = vld [vmem:[%s3430_s3 + $0x430] sm:$0xff]  ;;  %v1359_v55 = vld [vmem:[%s3430_s3 + $0x2e8] sm:$0xff] }
 0x215   : > { %v3055_v48 = vsel %vm1466_vm9, %v1465_v33, %v1463_v3  ;;  %v1339_v33 = vld [vmem:[%s3430_s3 + $0x248] sm:$0xff]  ;;  %v1340_v3 = vld [vmem:[%s3430_s3 + $0x250] sm:$0xff] }
 0x216   : > { %2175 = vmatmul.msk.f32.vlgmr.msrb.gmra.mxu1 %vm1511_vm10, %v3055_v48  ;;  %2176 = vmatmul.msk.f32.vlgmr.msrb.gmra.mxu2 %vm1511_vm10, %v3055_v48 }
 0x217   : > { %2177 = vmatmul.msk.f32.vlgmr.msrb.gmra.mxu3 %vm1511_vm10, %v3055_v48  ;;  %1642 = vmatpush.msrb.mxu1 %v1412_v5  ;;  %v1341_v5 = vld [vmem:[%s3430_s3 + $0x258] sm:$0xff] }
 0x218   : > { %1662 = vmatpush.msrb.mxu2 %v1413_v18  ;;  %1682 = vmatpush.msrb.mxu3 %v1414_v6  ;;  %v1319_v18 = vld [vmem:[%s3430_s3 + $0x1a8] sm:$0xff]  ;;  %v1320_v6 = vld [vmem:[%s3430_s3 + $0x1b0] sm:$0xff] }
 0x219   : > { %2187 = vmatmul.msk.f32.vlgmr.msra.gmra.mxu0 %vm1511_vm10, %v3055_v48  ;;  %1643 = vmatpush.msrb.mxu1 %v1392_v31  ;;  %v1321_v31 = vld [vmem:[%s3430_s3 + $0x1b8] sm:$0xff] }
 0x21a   : > { %1663 = vmatpush.msrb.mxu2 %v1393_v20  ;;  %1683 = vmatpush.msrb.mxu3 %v1394_v21  ;;  %v1299_v20 = vld [vmem:[%s3430_s3 + $0x108] sm:$0xff]  ;;  %v1300_v21 = vld [vmem:[%s3430_s3 + $0x110] sm:$0xff] }
 0x21b   : > { %1644 = vmatpush.msrb.mxu1 %v1372_v43  ;;  %v1301_v43 = vld [vmem:[%s3430_s3 + $0x118] sm:$0xff] }
 0x21c   : > { %1664 = vmatpush.msrb.mxu2 %v1373_v37  ;;  %1684 = vmatpush.msrb.mxu3 %v1374_v39  ;;  %v1279_v37 = vld [vmem:[%s3430_s3 + $0x68] sm:$0xff]  ;;  %v1280_v39 = vld [vmem:[%s3430_s3 + $0x70] sm:$0xff] }
 0x21d   : > { %1645 = vmatpush.msrb.mxu1 %v1352_v57  ;;  %v1281_v57 = vld [vmem:[%s3430_s3 + $0x78] sm:$0xff] }
 0x21e   : > { %1665 = vmatpush.msrb.mxu2 %v1353_v50  ;;  %1685 = vmatpush.msrb.mxu3 %v1354_v62  ;;  %v1423_v50 = vld [vmem:[%s3430_s3 + $0x4e8] sm:$0xff]  ;;  %v1424_v62 = vld [vmem:[%s3430_s3 + $0x4f0] sm:$0xff] }
 0x21f   : > { %2178 = vmatmul.msk.f32.vlgmr.msra.gmra.mxu1 %vm1511_vm10, %v3055_v48  ;;  %2179 = vmatmul.msk.f32.vlgmr.msra.gmra.mxu2 %vm1511_vm10, %v3055_v48 }
 0x220   : > { %2180 = vmatmul.msk.f32.vlgmr.msra.gmra.mxu3 %vm1511_vm10, %v3055_v48  ;;  %1646 = vmatpush.msrb.mxu1 %v1332_v9  ;;  %v1425_v9 = vld [vmem:[%s3430_s3 + $0x4f8] sm:$0xff] }
 0x221   : > { %1666 = vmatpush.msrb.mxu2 %v1333_v14  ;;  %1686 = vmatpush.msrb.mxu3 %v1334_v0  ;;  %v1403_v14 = vld [vmem:[%s3430_s3 + $0x448] sm:$0xff]  ;;  %v1404_v0 = vld [vmem:[%s3430_s3 + $0x450] sm:$0xff] }
 0x222   : > { %2191 = vmatmul.msk.f32.vlgmr.msrb.gmra.mxu0 %vm1511_vm10, %v3055_v48  ;;  %1647 = vmatpush.msrb.mxu1 %v1312_v49  ;;  %v1405_v49 = vld [vmem:[%s3430_s3 + $0x458] sm:$0xff] }
 0x223   : > { %1667 = vmatpush.msrb.mxu2 %v1313_v15  ;;  %1687 = vmatpush.msrb.mxu3 %v1314_v51  ;;  %v1383_v15 = vld [vmem:[%s3430_s3 + $0x3a8] sm:$0xff]  ;;  %v1384_v51 = vld [vmem:[%s3430_s3 + $0x3b0] sm:$0xff] }
 0x224   : > { %1648 = vmatpush.msrb.mxu1 %v1292_v1  ;;  %v1385_v1 = vld [vmem:[%s3430_s3 + $0x3b8] sm:$0xff] }
 0x225   : > { %1668 = vmatpush.msrb.mxu2 %v1293_v53  ;;  %1688 = vmatpush.msrb.mxu3 %v1294_v52  ;;  %v1363_v53 = vld [vmem:[%s3430_s3 + $0x308] sm:$0xff]  ;;  %v1364_v52 = vld [vmem:[%s3430_s3 + $0x310] sm:$0xff] }
 0x226   : > { %1649 = vmatpush.msrb.mxu1 %v1272_v40  ;;  %v1365_v40 = vld [vmem:[%s3430_s3 + $0x318] sm:$0xff] }
 0x227   : > { %1669 = vmatpush.msrb.mxu2 %v1273_v11  ;;  %1689 = vmatpush.msrb.mxu3 %v1274_v22  ;;  %v1343_v11 = vld [vmem:[%s3430_s3 + $0x268] sm:$0xff]  ;;  %v1344_v22 = vld [vmem:[%s3430_s3 + $0x270] sm:$0xff] }
 0x228   : > { %1702 = vmatpush.msra.mxu1 %v1415_v60  ;;  %2182 = vmatmul.msk.f32.vlgmr.msrb.gmra.mxu2 %vm1511_vm10, %v3055_v48  ;;  %v1345_v60 = vld [vmem:[%s3430_s3 + $0x278] sm:$0xff] }
 0x229   : > { %1722 = vmatpush.msra.mxu2 %v1416_v23  ;;  %1742 = vmatpush.msra.mxu3 %v1417_v56  ;;  %v1323_v23 = vld [vmem:[%s3430_s3 + $0x1c8] sm:$0xff]  ;;  %v1324_v56 = vld [vmem:[%s3430_s3 + $0x1d0] sm:$0xff] }
 0x22a   : > { %2181 = vmatmul.msk.f32.vlgmr.msrb.gmra.mxu1 %vm1511_vm10, %v3055_v48  ;;  %2183 = vmatmul.msk.f32.vlgmr.msrb.gmra.mxu3 %vm1511_vm10, %v3055_v48 }
 0x22b   : > { %1703 = vmatpush.msra.mxu1 %v1395_v24  ;;  %1723 = vmatpush.msra.mxu2 %v1396_v29  ;;  %v1325_v24 = vld [vmem:[%s3430_s3 + $0x1d8] sm:$0xff]  ;;  %v1303_v29 = vld [vmem:[%s3430_s3 + $0x128] sm:$0xff] }
 0x22c   : > { %1743 = vmatpush.msra.mxu3 %v1397_v19  ;;  %v1304_v19 = vld [vmem:[%s3430_s3 + $0x130] sm:$0xff] }
 0x22d   : > { %1704 = vmatpush.msra.mxu1 %v1375_v26  ;;  %1724 = vmatpush.msra.mxu2 %v1376_v28  ;;  %v1305_v26 = vld [vmem:[%s3430_s3 + $0x138] sm:$0xff]  ;;  %v1283_v28 = vld [vmem:[%s3430_s3 + $0x88] sm:$0xff] }
 0x22e   : > { %1744 = vmatpush.msra.mxu3 %v1377_v12  ;;  %v1284_v12 = vld [vmem:[%s3430_s3 + $0x90] sm:$0xff] }
 0x22f   : > { %1705 = vmatpush.msra.mxu1 %v1355_v63  ;;  %1725 = vmatpush.msra.mxu2 %v1356_v13  ;;  %v1285_v63 = vld [vmem:[%s3430_s3 + $0x98] sm:$0xff] }
 0x230   : > { %1745 = vmatpush.msra.mxu3 %v1357_v30 }
 0x231   : > { %1706 = vmatpush.msra.mxu1 %v1335_v45  ;;  %1726 = vmatpush.msra.mxu2 %v1336_v44 }
 0x232   : > { %1746 = vmatpush.msra.mxu3 %v1337_v16  ;;  %v1426_v16 = vld [vmem:[%s3431_s4] sm:$0xff] }
 0x233   : > { %1707 = vmatpush.msra.mxu1 %v1315_v35  ;;  %1727 = vmatpush.msra.mxu2 %v1316_v38  ;;  %v1474_v38 = vperm.slane %v1426_v16, 3 }
 0x234   : > { %1747 = vmatpush.msra.mxu3 %v1317_v10  ;;  %v1472_v10 = vperm.slane %v1426_v16, 1 }
 0x235   : > { %1708 = vmatpush.msra.mxu1 %v1295_v32  ;;  %1728 = vmatpush.msra.mxu2 %v1296_v58  ;;  %v1473_v32 = vperm.slane %v1426_v16, 2  ;;  %v1475_v58 = vperm.slane %v1426_v16, 4 }
 0x236   : > { %1748 = vmatpush.msra.mxu3 %v1297_v7  ;;  %v1476_v7 = vperm.slane %v1426_v16, 5 }
 0x237   : > { %1709 = vmatpush.msra.mxu1 %v1275_v36  ;;  %1729 = vmatpush.msra.mxu2 %v1276_v59 }
 0x238   : > { %1749 = vmatpush.msra.mxu3 %v1277_v8  ;;  %2184 = vmatmul.msk.f32.vlgmr.msra.gmra.mxu1 %vm1511_vm10, %v3055_v48  ;;  %v1477_v8 = vperm.slane %v1426_v16, 6 }
 0x239   : > { %2185 = vmatmul.msk.f32.vlgmr.msra.gmra.mxu2 %vm1511_vm10, %v3055_v48  ;;  %2186 = vmatmul.msk.f32.vlgmr.msra.gmra.mxu3 %vm1511_vm10, %v3055_v48 }
 0x23a   : > { %1782 = vmatpush.msrb.mxu1 %v1419_v54  ;;  %1802 = vmatpush.msrb.mxu2 %v1420_v27 }
 0x23b   : > { %1822 = vmatpush.msrb.mxu3 %v1421_v2 }
 0x23c   : > { %1783 = vmatpush.msrb.mxu1 %v1399_v46  ;;  %1803 = vmatpush.msrb.mxu2 %v1400_v42  ;;  %v1478_v42 = vperm.slane %v1426_v16, 7 }
 0x23d   : > { %1823 = vmatpush.msrb.mxu3 %v1401_v4  ;;  %v1471_v4 = vperm.slane %v1426_v16, 0 }
 0x23e   : > { %1784 = vmatpush.msrb.mxu1 %v1379_v25  ;;  %1804 = vmatpush.msrb.mxu2 %v1380_v47 }
 0x23f   : > { %1824 = vmatpush.msrb.mxu3 %v1381_v34 }
 0x240   : > { %1785 = vmatpush.msrb.mxu1 %v1359_v55  ;;  %1805 = vmatpush.msrb.mxu2 %v1360_v41 }
 0x241   : > { %1825 = vmatpush.msrb.mxu3 %v1361_v17 }
 0x242   : > { %1786 = vmatpush.msrb.mxu1 %v1339_v33  ;;  %1806 = vmatpush.msrb.mxu2 %v1340_v3 }
 0x243   : > { %1826 = vmatpush.msrb.mxu3 %v1341_v5 }
 0x244   : > { %1787 = vmatpush.msrb.mxu1 %v1319_v18  ;;  %1807 = vmatpush.msrb.mxu2 %v1320_v6 }
 0x245   : > { %1827 = vmatpush.msrb.mxu3 %v1321_v31 }
 0x246   : > { %1788 = vmatpush.msrb.mxu1 %v1299_v20  ;;  %1808 = vmatpush.msrb.mxu2 %v1300_v21 }
 0x247   : > { %1828 = vmatpush.msrb.mxu3 %v1301_v43 }
 0x248   : > { %1789 = vmatpush.msrb.mxu1 %v1279_v37  ;;  %1809 = vmatpush.msrb.mxu2 %v1280_v39 }
 0x249   : > { %1829 = vmatpush.msrb.mxu3 %v1281_v57  ;;  %2188 = vmatmul.msk.f32.vlgmr.msrb.gmra.mxu1 %vm1511_vm10, %v3055_v48 }
 0x24a   : > { %2189 = vmatmul.msk.f32.vlgmr.msrb.gmra.mxu2 %vm1511_vm10, %v3055_v48  ;;  %2190 = vmatmul.msk.f32.vlgmr.msrb.gmra.mxu3 %vm1511_vm10, %v3055_v48 }
 0x24b   : > { %1862 = vmatpush.msra.mxu1 %v1423_v50  ;;  %1882 = vmatpush.msra.mxu2 %v1424_v62 }
 0x24c   : > { %1902 = vmatpush.msra.mxu3 %v1425_v9  ;;  %v1427_v9 = vld [vmem:[%s3431_s4 + $0x8] sm:$0xff] }
 0x24d   : > { %1863 = vmatpush.msra.mxu1 %v1403_v14  ;;  %1883 = vmatpush.msra.mxu2 %v1404_v0  ;;  %v1481_v14 = vperm.slane %v1427_v9, 2  ;;  %v1482_v0 = vperm.slane %v1427_v9, 3 }
 0x24e   : > { %1903 = vmatpush.msra.mxu3 %v1405_v49 }
 0x24f   : > { %1864 = vmatpush.msra.mxu1 %v1383_v15  ;;  %1884 = vmatpush.msra.mxu2 %v1384_v51  ;;  %v1480_v51 = vperm.slane %v1427_v9, 1 }
 0x250   : > { %1904 = vmatpush.msra.mxu3 %v1385_v1  ;;  %v1484_v1 = vperm.slane %v1427_v9, 5 }
 0x251   : > { %1865 = vmatpush.msra.mxu1 %v1363_v53  ;;  %1885 = vmatpush.msra.mxu2 %v1364_v52  ;;  %v1483_v53 = vperm.slane %v1427_v9, 4 }
 0x252   : > { %1905 = vmatpush.msra.mxu3 %v1365_v40 }
 0x253   : > { %1866 = vmatpush.msra.mxu1 %v1343_v11  ;;  %1886 = vmatpush.msra.mxu2 %v1344_v22 }
 0x254   : > { %1906 = vmatpush.msra.mxu3 %v1345_v60 }
 0x255   : > { %1867 = vmatpush.msra.mxu1 %v1323_v23  ;;  %1887 = vmatpush.msra.mxu2 %v1324_v56  ;;  %v1485_v56 = vperm.slane %v1427_v9, 6 }
 0x256   : > { %1907 = vmatpush.msra.mxu3 %v1325_v24  ;;  %v1486_v24 = vperm.slane %v1427_v9, 7 }
 0x257   : > { %1868 = vmatpush.msra.mxu1 %v1303_v29  ;;  %1888 = vmatpush.msra.mxu2 %v1304_v19  ;;  %v1479_v19 = vperm.slane %v1427_v9, 0 }
 0x258   : > { %1908 = vmatpush.msra.mxu3 %v1305_v26 }
 0x259   : > { %1869 = vmatpush.msra.mxu1 %v1283_v28  ;;  %1889 = vmatpush.msra.mxu2 %v1284_v12 }
 0x25a   : > { %1909 = vmatpush.msra.mxu3 %v1285_v63  ;;  %2192 = vmatmul.msk.f32.vlgmr.msra.gmra.mxu1 %vm1511_vm10, %v3055_v48 }
 0x25b   : > { %2193 = vmatmul.msk.f32.vlgmr.msra.gmra.mxu2 %vm1511_vm10, %v3055_v48  ;;  %2194 = vmatmul.msk.f32.vlgmr.msra.gmra.mxu3 %vm1511_vm10, %v3055_v48 }
 0x293   : > { %v1531_v13 = vpop.f32.mrf.mxu1 }
 0x294   : > { %v1532_v5 = vadd.f32 %v1531_v13, %v1471_v4 }
 0x296   : > { %v1771_v40 = vpop.f32.mrf.mxu0 }
 0x297   : > { %v1772_v29 = vadd.f32 %v1771_v40, %v1483_v53 }
 0x299   : > { %v1551_v30 = vpop.f32.mrf.mxu2  ;;  %v1944_v16 = vrot.slane %v1772_v29, 4 }
 0x29a   : > { %v1571_v45 = vpop.f32.mrf.mxu3  ;;  %v1552_v54 = vadd.f32 %v1551_v30, %v1472_v10 }
 0x29b   : > { %v1572_v27 = vadd.f32 %v1571_v45, %v1473_v32 }
 0x29c   : > { %v1591_v44 = vpop.f32.mrf.mxu1  ;;  %v1934_v34 = vrot.slane %v1552_v54, 7 }
 0x29d   : > { %v1592_v59 = vadd.f32 %v1591_v44, %v1474_v38  ;;  %v1935_v41 = vrot.slane %v1572_v27, 6 }
 0x29e   : > { %v1952_v20 = vsel %vm1951_vm11, %v1532_v5, %v1934_v34 }
 0x29f   : > { %v1936_v25 = vrot.slane %v1592_v59, 5 }
 0x2a1   : > { %v1954_v18 = vsel %vm1953_vm12, %v1935_v41, %v1936_v25 }
 0x2a2   : > { %v1611_v35 = vpop.f32.mrf.mxu2  ;;  %v1956_v37 = vsel %vm1955_vm13, %v1952_v20, %v1954_v18 }
 0x2a3   : > { %v1631_v36 = vpop.f32.mrf.mxu3  ;;  %v1612_v2 = vadd.f32 %v1611_v35, %v1475_v58 }
 0x2a4   : > { %v1632_v46 = vadd.f32 %v1631_v36, %v1476_v7 }
 0x2a5   : > { %v1937_v17 = vrot.slane %v1612_v2, 4 }
 0x2a6   : > { %v1938_v33 = vrot.slane %v1632_v46, 3 }
 0x2a7   : > { %v1651_v48 = vpop.f32.mrf.mxu1 }
 0x2a8   : > { %v1652_v47 = vadd.f32 %v1651_v48, %v1477_v8  ;;  %v1958_v21 = vsel %vm1957_vm14, %v1937_v17, %v1938_v33  ;;  %v1428_v48 = vld [vmem:[%s3431_s4 + $0x10] sm:$0xf] }
 0x2a9   : > { %v1488_v27 = vperm.slane %v1428_v48, 1  ;;  %v1490_v4 = vperm.slane %v1428_v48, 3  ;;  %v1487_v25 = vperm.slane %v1428_v48, 0 }
 0x2aa   : > { %v1939_v6 = vrot.slane %v1652_v47, 2  ;;  %v1851_v47 = vpop.f32.mrf.mxu0 }
 0x2ab   : > { %v1671_v55 = vpop.f32.mrf.mxu2 }
 0x2ac   : > { %v1672_v3 = vadd.f32 %v1671_v55, %v1478_v42  ;;  %v1489_v42 = vperm.slane %v1428_v48, 2 }
 0x2ad   : > { %v1691_v50 = vpop.f32.mrf.mxu3 }
 0x2ae   : > { %v1940_v31 = vrot.slane %v1672_v3, 1  ;;  %v1692_v35 = vadd.f32 %v1691_v50, %v1479_v19  ;;  %v1852_v3 = vadd.f32 %v1851_v47, %v1487_v25 }
 0x2b0   : > { %v1960_v43 = vsel %vm1959_vm15, %v1939_v6, %v1940_v31 }
 0x2b1   : > { %v1962_v39 = vsel %vm1961_vm0, %v1958_v21, %v1960_v43 }
 0x2b2   : > { %v1964_v57 = vsel %vm1963_vm1, %v1956_v37, %v1962_v39 }
 0x2b3   : > { %1978 = vst [vmem:[%s3392_s26] sm:$0xff] %v1964_v57 }
 0x2b5   : > { %v1711_v62 = vpop.f32.mrf.mxu1 }
 0x2b6   : > { %v1712_v60 = vadd.f32 %v1711_v62, %v1480_v51 }
 0x2b8   : > { %v1941_v13 = vrot.slane %v1712_v60, 7 }
 0x2ba   : > { %v1965_v58 = vsel %vm1951_vm11, %v1692_v35, %v1941_v13 }
 0x2bc   : > { %v1731_v49 = vpop.f32.mrf.mxu2  ;;  %v1751_v15 = vpop.f32.mrf.mxu3 }
 0x2bd   : > { %v1732_v11 = vadd.f32 %v1731_v49, %v1481_v14  ;;  %v1752_v22 = vadd.f32 %v1751_v15, %v1482_v0 }
 0x2bf   : > { %v1942_v26 = vrot.slane %v1732_v11, 6  ;;  %v1943_v28 = vrot.slane %v1752_v22, 5 }
 0x2c1   : > { %v1966_v38 = vsel %vm1953_vm12, %v1942_v26, %v1943_v28 }
 0x2c2   : > { %v1967_v59 = vsel %vm1955_vm13, %v1965_v58, %v1966_v38 }
 0x2c6   : > { %v1791_v52 = vpop.f32.mrf.mxu1 }
 0x2c7   : > { %v1792_v23 = vadd.f32 %v1791_v52, %v1484_v1 }
 0x2c9   : > { %v1945_v30 = vrot.slane %v1792_v23, 3 }
 0x2cb   : > { %v1968_v7 = vsel %vm1957_vm14, %v1944_v16, %v1945_v30 }
 0x2cd   : > { %v1811_v12 = vpop.f32.mrf.mxu2  ;;  %v1831_v63 = vpop.f32.mrf.mxu3 }
 0x2ce   : > { %v1812_v45 = vadd.f32 %v1811_v12, %v1485_v56  ;;  %v1832_v44 = vadd.f32 %v1831_v63, %v1486_v24 }
 0x2d0   : > { %v1946_v10 = vrot.slane %v1812_v45, 2  ;;  %v1947_v32 = vrot.slane %v1832_v44, 1 }
 0x2d2   : > { %v1969_v36 = vsel %vm1959_vm15, %v1946_v10, %v1947_v32 }
 0x2d3   : > { %v1970_v8 = vsel %vm1961_vm0, %v1968_v7, %v1969_v36 }
 0x2d4   : > { %v1971_v54 = vsel %vm1963_vm1, %v1967_v59, %v1970_v8 }
 0x2d5   : > { %1979 = vst [vmem:[%s3392_s26 + $0x8] sm:$0xff] %v1971_v54 }
 0x2d7   : > { %v1871_v2 = vpop.f32.mrf.mxu1 }
 0x2d8   : > { %v1872_v46 = vadd.f32 %v1871_v2, %v1488_v27 }
 0x2da   : > { %v1948_v41 = vrot.slane %v1872_v46, 7 }
 0x2dc   : > { %v1972_v6 = vsel %vm1951_vm11, %v1852_v3, %v1948_v41 }
 0x2de   : > { %v1891_v34 = vpop.f32.mrf.mxu2  ;;  %v1911_v55 = vpop.f32.mrf.mxu3 }
 0x2df   : > { %v1892_v17 = vadd.f32 %v1891_v34, %v1489_v42  ;;  %v1912_v33 = vadd.f32 %v1911_v55, %v1490_v4 }
 0x2e1   : > { %v1949_v5 = vrot.slane %v1892_v17, 6  ;;  %v1950_v18 = vrot.slane %v1912_v33, 5 }
 0x2e3   : > { %v1973_v31 = vsel %vm1953_vm12, %v1949_v5, %v1950_v18 }
 0x2e4   : > { %v1974_v20 = vsel %vm1955_vm13, %v1972_v6, %v1973_v31 }
 0x2e5   : > { %1984 = vst.msk [vmem:[%s3392_s26 + $0x10] sm:$0xf] %vm1982_vm2, %v1974_v20 }
 0x2e6 PF: > { %s15_s20 = sadd.s32 1, %s2250_s20   ;;  %s3453_s18 = smov %s2246_s19 }
 0x2e7   : > { %p12_p5 = scmp.ge.s32.totalorder %s15_s20, 4   ;;  %s3454_s19 = smov %s3456_s21 }
 0x2e9   :  { %14 = sbr.rel (!%p12_p5) target bundleno = 2 (0x2), region = 81 }

</bundles_post_ra>
